<compile_context>
chip_gen: v6e
topology: v6e:2x2x1
jax: 0.10.0
libtpu: 0.0.40
codegen_flags: <defaults>
</compile_context>

<pallas_src>
import functools

import jax
import jax.numpy as jnp
from jax.experimental import pallas as pl
from jax.experimental.pallas import tpu as pltpu

# ----- "vocabs['specials']" + criterion configuration (deterministic) -------
PAD_IDX = 1          # criterion.ignore_index
UNK_IDX = 0
EOS_IDX = 2
LABEL_SMOOTHING = 0.1
TGT_SHIFT_INDEX = 1  # NMT-style shift


# ---------------------------------------------------------------------------
# Fused kernel: generator matmul + cross-entropy(sum, ignore_index, smoothing)
# + n_correct / n_tokens statistics.  Grid = (row tiles, vocab tiles); the
# vocab axis is an online-logsumexp reduction, the row axis is parallel.
# ---------------------------------------------------------------------------
def _ce_stats_kernel(x_ref, w_ref, b_ref, tgt_ref, out_ref,
                     m_sc, l_sc, s_sc, t_sc, amax_sc,
                     *, vocab, tv, label_smoothing, pad_idx):
    k = pl.program_id(1)

    @pl.when(k == 0)
    def _():
        m_sc[...] = jnp.full_like(m_sc, -jnp.inf)
        l_sc[...] = jnp.zeros_like(l_sc)
        s_sc[...] = jnp.zeros_like(s_sc)
        t_sc[...] = jnp.zeros_like(t_sc)
        amax_sc[...] = jnp.zeros_like(amax_sc)

    # generator Linear for this (row tile, vocab tile): native-dtype operands,
    # f32 accumulate on the MXU; everything downstream stays f32.
    logits = jnp.dot(x_ref[...], w_ref[...],
                     preferred_element_type=jnp.float32)
    logits = logits + b_ref[...].astype(jnp.float32)          # (tm, tv) f32

    tgt = tgt_ref[...]                                          # (tm, 1) int32
    col = jax.lax.broadcasted_iota(jnp.int32, logits.shape, 1) + k * tv

    # single cross-vocab max reused for both the online LSE and the argmax.
    local_max = jnp.max(logits, axis=-1, keepdims=True)
    is_max = logits == local_max
    local_amax = jnp.min(jnp.where(is_max, col, vocab), axis=-1, keepdims=True)

    # online logsumexp update.
    m_old = m_sc[...]
    m_new = jnp.maximum(m_old, local_max)
    l_sc[...] = (l_sc[...] * jnp.exp(m_old - m_new)
                 + jnp.sum(jnp.exp(logits - m_new), axis=-1, keepdims=True))
    # running argmax, first-index tie-break: only a strictly greater max takes
    # over, so exact ties keep the earlier (lower vocab index) tile.
    amax_sc[...] = jnp.where(local_max > m_old, local_amax, amax_sc[...])
    m_sc[...] = m_new

    # running sum of logits (for label smoothing) and running target logit
    # (gather via lane-compare one-hot, no scalar gather).
    s_sc[...] += jnp.sum(logits, axis=-1, keepdims=True)
    onehot = (col == tgt).astype(jnp.float32)
    t_sc[...] += jnp.sum(logits * onehot, axis=-1, keepdims=True)

    @pl.when(k == pl.num_programs(1) - 1)
    def _():
        lse = m_sc[...] + jnp.log(l_sc[...])                    # (tm, 1)
        nll = lse - t_sc[...]                                   # -log p_y
        smooth = lse - s_sc[...] / vocab                        # mean_c -log p_c
        per_tok = (1.0 - label_smoothing) * nll + label_smoothing * smooth

        non_pad = tgt != pad_idx
        npf = non_pad.astype(jnp.float32)
        loss = jnp.sum(per_tok * npf)
        corr = jnp.sum(jnp.logical_and(amax_sc[...] == tgt,
                                       non_pad).astype(jnp.float32))
        tok = jnp.sum(npf)

        # lane-packed partial stats for this row tile: [loss, corr, tok, 0...]
        lane = jax.lax.broadcasted_iota(jnp.int32, out_ref.shape, 2)
        out_ref[...] = jnp.where(
            lane == 0, loss,
            jnp.where(lane == 1, corr, jnp.where(lane == 2, tok, 0.0)))


def generator_ce_and_stats(x, flat_tgt, w, b, *, tm=256, tv=2048):
    """x: (N, H) model dtype, flat_tgt: (N,) int, w: (H, V), b: (V,).

    Returns (loss_sum, n_correct, n_tokens) as f32 scalars.
    """
    n, h = x.shape
    v = w.shape[1]

    # vocab tile: stream W from HBM in (H, tv) slabs.
    tv_eff = v if v <= tv else tv
    if tv_eff != v:
        assert v % tv_eff == 0 and tv_eff % 128 == 0, \
            "vocab must be a multiple of the vocab tile (pad the generator)"

    # row tile: pad N up so real batch shapes never hit a divisibility assert.
    n8 = ((n + 7) // 8) * 8
    tm_eff = min(tm, n8)
    n_pad = ((n + tm_eff - 1) // tm_eff) * tm_eff
    if n_pad != n:
        x = jnp.pad(x, ((0, n_pad - n), (0, 0)))
        flat_tgt = jnp.pad(flat_tgt, (0, n_pad - n), constant_values=PAD_IDX)

    tgt2d = flat_tgt.reshape(n_pad, 1).astype(jnp.int32)
    b2d = b.reshape(1, v).astype(jnp.float32)

    n_row_tiles = n_pad // tm_eff
    n_voc_tiles = v // tv_eff

    kernel = functools.partial(
        _ce_stats_kernel, vocab=v, tv=tv_eff,
        label_smoothing=LABEL_SMOOTHING, pad_idx=PAD_IDX)

    partials = pl.pallas_call(
        kernel,
        out_shape=jax.ShapeDtypeStruct((n_row_tiles, 8, 128), jnp.float32),
        grid_spec=pltpu.PrefetchScalarGridSpec(
            num_scalar_prefetch=0,
            grid=(n_row_tiles, n_voc_tiles),
            in_specs=[
                pl.BlockSpec((tm_eff, h), lambda i, k: (i, 0)),   # bottled output
                pl.BlockSpec((h, tv_eff), lambda i, k: (0, k)),   # generator W tile
                pl.BlockSpec((1, tv_eff), lambda i, k: (0, k)),   # generator bias tile
                pl.BlockSpec((tm_eff, 1), lambda i, k: (i, 0)),   # flat targets
            ],
            out_specs=pl.BlockSpec((1, 8, 128), lambda i, k: (i, 0, 0)),
            scratch_shapes=[
                pltpu.VMEM((tm_eff, 1), jnp.float32),   # running max
                pltpu.VMEM((tm_eff, 1), jnp.float32),   # running sum(exp)
                pltpu.VMEM((tm_eff, 1), jnp.float32),   # running sum(logits)
                pltpu.VMEM((tm_eff, 1), jnp.float32),   # running target logit
                pltpu.VMEM((tm_eff, 1), jnp.int32),     # running first argmax
            ],
        ),
        compiler_params=pltpu.CompilerParams(
            dimension_semantics=("parallel", "arbitrary")),
    )(x, w, b2d, tgt2d)

    loss = jnp.sum(partials[:, 0, 0])
    n_correct = jnp.sum(partials[:, 0, 1])
    n_tokens = jnp.sum(partials[:, 0, 2])
    return loss, n_correct, n_tokens


# ---------------------------------------------------------------------------
# LossCompute.forward equivalent
# ---------------------------------------------------------------------------
def loss_compute_forward(batch, output, gen_w, gen_b, estim=None,
                         *, tm=256, tv=2048):
    """Returns (loss, stats_dict, estimloss), mirroring LossCompute.forward."""
    bsz, tlen, hidden = output.shape
    flat_tgt = batch['tgt'][:, TGT_SHIFT_INDEX:].reshape(-1)     # (B*T,)
    x = output.reshape(bsz * tlen, hidden)                       # _bottle(output)

    loss, n_correct, n_tokens = generator_ce_and_stats(
        x, flat_tgt, gen_w, gen_b, tm=tm, tv=tv)

    if estim is not None:
        # nn.MSELoss(reduction='sum') on a (B,)-sized vector: plain XLA fuses
        # this for free; a Pallas launch would be pure overhead.
        sco = batch['sco'].astype(estim.dtype)
        estimloss = jnp.sum((estim.astype(jnp.float32)
                             - sco.astype(jnp.float32)) ** 2)
    else:
        estimloss = jnp.zeros((), jnp.float32)

    n_sents = int(batch['srclen'].shape[0])
    stats = {
        'loss': loss,
        'auxloss': estimloss,
        'n_batchs': 1 if n_sents else 0,
        'n_sents': n_sents,
        'n_tokens': n_tokens,
        'n_correct': n_correct,
    }
    return loss, stats, estimloss


# ---------------------------------------------------------------------------
# Pure-JAX reference for correctness checking (f32 math on the same
# bf16-rounded operands the kernel consumes).
# ---------------------------------------------------------------------------
def _reference(batch, output, gen_w, gen_b, estim):
    bsz, tlen, hidden = output.shape
    flat_tgt = batch['tgt'][:, TGT_SHIFT_INDEX:].reshape(-1)
    x = output.reshape(bsz * tlen, hidden).astype(jnp.float32)
    logits = jnp.dot(x, gen_w.astype(jnp.float32),
                     precision=jax.lax.Precision.HIGHEST)
    logits = logits + gen_b.astype(jnp.float32)
    logp = jax.nn.log_softmax(logits, axis=-1)
    nll = -jnp.take_along_axis(logp, flat_tgt[:, None], axis=-1)[:, 0]
    smooth = -jnp.mean(logp, axis=-1)
    per = (1.0 - LABEL_SMOOTHING) * nll + LABEL_SMOOTHING * smooth
    mask = flat_tgt != PAD_IDX
    loss = jnp.sum(per * mask)
    pred = jnp.argmax(logits, axis=-1)
    n_correct = jnp.sum((pred == flat_tgt) & mask)
    n_tokens = jnp.sum(mask)
    eloss = jnp.sum((estim.astype(jnp.float32)
                     - batch['sco'].astype(jnp.float32)) ** 2)
    return loss, n_correct, n_tokens, eloss


if __name__ == "__main__":
    key = jax.random.PRNGKey(0)
    k_out, k_tgt, k_w, k_b, k_sco, k_est = jax.random.split(key, 6)

    # decoder-output len T, tgt has T+1 tokens; N = B*T = 124 (not a tile
    # multiple -> exercises PAD-row padding).  Demo tm/tv are small so both
    # the row grid axis and the online-logsumexp vocab axis have >1 tile.
    B, T, H, V = 4, 31, 64, 256

    output = jax.random.normal(k_out, (B, T, H), dtype=jnp.float32)
    output = output.astype(jnp.bfloat16)          # model-native bf16 activations
    tgt = jax.random.randint(k_tgt, (B, T + 1), 0, V, dtype=jnp.int32)
    # sprinkle a few padding tokens so ignore_index is exercised
    tgt = tgt.at[0, -3:].set(PAD_IDX)
    tgt = tgt.at[1, -1:].set(PAD_IDX)
    tgt = tgt.at[2, -5:].set(PAD_IDX)

    gen_w = (0.05 * jax.random.normal(k_w, (H, V), dtype=jnp.float32)
             ).astype(jnp.bfloat16)               # bf16 generator weight
    gen_b = 0.01 * jax.random.normal(k_b, (V,), dtype=jnp.float32)

    batch = {
        'tgt': tgt,
        'sco': jax.random.normal(k_sco, (B,), dtype=jnp.float32),
        'srclen': jnp.full((B,), T, dtype=jnp.int32),
        'cid': ['corpus_a'] * B,
        'cid_line_number': list(range(B)),
    }
    estim = jax.random.normal(k_est, (B,), dtype=jnp.float32)

    loss, stats, estimloss = loss_compute_forward(
        batch, output, gen_w, gen_b, estim, tm=64, tv=128)
    loss = jax.block_until_ready(loss)
    estimloss = jax.block_until_ready(estimloss)

    ref_loss, ref_corr, ref_tok, ref_eloss = _reference(
        batch, output, gen_w, gen_b, estim)
    assert jnp.allclose(loss, ref_loss, rtol=1e-3, atol=1e-3), (loss, ref_loss)
    assert int(stats['n_correct']) == int(ref_corr), (stats['n_correct'], ref_corr)
    assert int(stats['n_tokens']) == int(ref_tok), (stats['n_tokens'], ref_tok)
    assert jnp.allclose(estimloss, ref_eloss, rtol=1e-5, atol=1e-5)

    print("KERNEL_OK")
</pallas_src>

<mosaic_0001>
module attributes {stable_mosaic.version = 11 : i64} {
  func.func @_ce_stats_kernel(%arg0: i32, %arg1: i32, %arg2: memref<64x64xbf16, #tpu.memory_space<vmem>>, %arg3: memref<64x128xbf16, #tpu.memory_space<vmem>>, %arg4: memref<1x128xf32, #tpu.memory_space<vmem>>, %arg5: memref<64x1xi32, #tpu.memory_space<vmem>>, %arg6: memref<1x8x128xf32, #tpu.memory_space<vmem>>, %arg7: memref<64x1xf32, #tpu.memory_space<vmem>>, %arg8: memref<64x1xf32, #tpu.memory_space<vmem>>, %arg9: memref<64x1xf32, #tpu.memory_space<vmem>>, %arg10: memref<64x1xf32, #tpu.memory_space<vmem>>, %arg11: memref<64x1xi32, #tpu.memory_space<vmem>>) attributes {dimension_semantics = [#tpu.dimension_semantics<parallel>, #tpu.dimension_semantics<arbitrary>], iteration_bounds = array<i64: 2, 2>, scalar_prefetch = 0 : i64, scratch_operands = 5 : i64, tpu.core_type = #tpu.core_type<tc>, window_params = [{transform_indices = @transform_0, window_bounds = array<i64: 64, 64>}, {transform_indices = @transform_1, window_bounds = array<i64: 64, 128>}, {transform_indices = @transform_2, window_bounds = array<i64: 1, 128>}, {transform_indices = @transform_3, window_bounds = array<i64: 64, 1>}, {transform_indices = @transform_4, window_bounds = array<i64: 1, 8, 128>}]} {
    %c0_i32 = arith.constant 0 : i32
    %0 = arith.cmpi eq, %arg1, %c0_i32 : i32
    %1 = arith.extui %0 : i1 to i32
    %c0_i32_0 = arith.constant 0 : i32
    %2 = arith.cmpi ne, %1, %c0_i32_0 : i32
    scf.if %2 {
      %cst_34 = arith.constant 0xFF800000 : f32
      %58 = vector.broadcast %cst_34 : f32 to vector<64x1xf32>
      %c0_35 = arith.constant 0 : index
      %c0_36 = arith.constant 0 : index
      %59 = vector.load %arg7[%c0_35, %c0_36] : memref<64x1xf32, #tpu.memory_space<vmem>>, vector<64x1xf32>
      tpu.vector_store %arg7[%c0_35, %c0_36], %58 {strides = array<i32>} : memref<64x1xf32, #tpu.memory_space<vmem>>, vector<64x1xf32>,
      %cst_37 = arith.constant 0.000000e+00 : f32
      %60 = vector.broadcast %cst_37 : f32 to vector<64x1xf32>
      %c0_38 = arith.constant 0 : index
      %c0_39 = arith.constant 0 : index
      %61 = vector.load %arg8[%c0_38, %c0_39] : memref<64x1xf32, #tpu.memory_space<vmem>>, vector<64x1xf32>
      tpu.vector_store %arg8[%c0_38, %c0_39], %60 {strides = array<i32>} : memref<64x1xf32, #tpu.memory_space<vmem>>, vector<64x1xf32>,
      %cst_40 = arith.constant 0.000000e+00 : f32
      %62 = vector.broadcast %cst_40 : f32 to vector<64x1xf32>
      %c0_41 = arith.constant 0 : index
      %c0_42 = arith.constant 0 : index
      %63 = vector.load %arg9[%c0_41, %c0_42] : memref<64x1xf32, #tpu.memory_space<vmem>>, vector<64x1xf32>
      tpu.vector_store %arg9[%c0_41, %c0_42], %62 {strides = array<i32>} : memref<64x1xf32, #tpu.memory_space<vmem>>, vector<64x1xf32>,
      %cst_43 = arith.constant 0.000000e+00 : f32
      %64 = vector.broadcast %cst_43 : f32 to vector<64x1xf32>
      %c0_44 = arith.constant 0 : index
      %c0_45 = arith.constant 0 : index
      %65 = vector.load %arg10[%c0_44, %c0_45] : memref<64x1xf32, #tpu.memory_space<vmem>>, vector<64x1xf32>
      tpu.vector_store %arg10[%c0_44, %c0_45], %64 {strides = array<i32>} : memref<64x1xf32, #tpu.memory_space<vmem>>, vector<64x1xf32>,
      %c0_i32_46 = arith.constant 0 : i32
      %66 = vector.broadcast %c0_i32_46 : i32 to vector<64x1xi32>
      %c0_47 = arith.constant 0 : index
      %c0_48 = arith.constant 0 : index
      %67 = vector.load %arg11[%c0_47, %c0_48] : memref<64x1xi32, #tpu.memory_space<vmem>>, vector<64x1xi32>
      tpu.vector_store %arg11[%c0_47, %c0_48], %66 {strides = array<i32>} : memref<64x1xi32, #tpu.memory_space<vmem>>, vector<64x1xi32>,
    } else {
    }
    %c0 = arith.constant 0 : index
    %c0_1 = arith.constant 0 : index
    %3 = vector.load %arg2[%c0, %c0_1] : memref<64x64xbf16, #tpu.memory_space<vmem>>, vector<64x64xbf16>
    %c0_2 = arith.constant 0 : index
    %c0_3 = arith.constant 0 : index
    %4 = vector.load %arg3[%c0_2, %c0_3] : memref<64x128xbf16, #tpu.memory_space<vmem>>, vector<64x128xbf16>
    %cst = arith.constant dense<0.000000e+00> : vector<64x128xf32>
    %5 = tpu.matmul %3, %4, %cst {dimension_numbers = #tpu.dot_dimension_numbers<[1], [0], [0], [1], [0, 0, 1, 1], [], []>} : vector<64x64xbf16>, vector<64x128xbf16>, vector<64x128xf32> -> vector<64x128xf32>
    %c0_4 = arith.constant 0 : index
    %c0_5 = arith.constant 0 : index
    %6 = vector.load %arg4[%c0_4, %c0_5] : memref<1x128xf32, #tpu.memory_space<vmem>>, vector<1x128xf32>
    %7 = vector.broadcast %6 : vector<1x128xf32> to vector<64x128xf32>
    %8 = arith.addf %5, %7 : vector<64x128xf32>
    %c0_6 = arith.constant 0 : index
    %c0_7 = arith.constant 0 : index
    %9 = vector.load %arg5[%c0_6, %c0_7] : memref<64x1xi32, #tpu.memory_space<vmem>>, vector<64x1xi32>
    %10 = tpu.iota {dimensions = array<i32: 1>} : vector<64x128xi32>
    %c128_i32 = arith.constant 128 : i32
    %11 = arith.muli %arg1, %c128_i32 : i32
    %12 = vector.broadcast %11 : i32 to vector<64x128xi32>
    %13 = arith.addi %10, %12 : vector<64x128xi32>
    %cst_8 = arith.constant dense<0xFF800000> : vector<64xf32>
    %14 = vector.multi_reduction <maximumf>, %8, %cst_8 [1] : vector<64x128xf32> to vector<64xf32>
    %15 = vector.shape_cast %14 : vector<64xf32> to vector<64x1xf32>
    %16 = vector.broadcast %15 : vector<64x1xf32> to vector<64x128xf32>
    %17 = arith.cmpf oeq, %8, %16 : vector<64x128xf32>
    %c256_i32 = arith.constant 256 : i32
    %18 = vector.broadcast %c256_i32 : i32 to vector<64x128xi32>
    %19 = arith.select %17, %13, %18 : vector<64x128xi1>, vector<64x128xi32>
    %cst_9 = arith.constant dense<2147483647> : vector<64xi32>
    %20 = vector.multi_reduction <minsi>, %19, %cst_9 [1] : vector<64x128xi32> to vector<64xi32>
    %21 = vector.shape_cast %20 : vector<64xi32> to vector<64x1xi32>
    %c0_10 = arith.constant 0 : index
    %c0_11 = arith.constant 0 : index
    %22 = vector.load %arg7[%c0_10, %c0_11] : memref<64x1xf32, #tpu.memory_space<vmem>>, vector<64x1xf32>
    %23 = arith.maximumf %22, %15 : vector<64x1xf32>
    %c0_12 = arith.constant 0 : index
    %c0_13 = arith.constant 0 : index
    %24 = vector.load %arg8[%c0_12, %c0_13] : memref<64x1xf32, #tpu.memory_space<vmem>>, vector<64x1xf32>
    %25 = arith.subf %22, %23 : vector<64x1xf32>
    %26 = math.exp %25 : vector<64x1xf32>
    %27 = arith.mulf %24, %26 : vector<64x1xf32>
    %28 = vector.broadcast %23 : vector<64x1xf32> to vector<64x128xf32>
    %29 = arith.subf %8, %28 : vector<64x128xf32>
    %30 = math.exp %29 : vector<64x128xf32>
    %cst_14 = arith.constant dense<0.000000e+00> : vector<64xf32>
    %31 = vector.multi_reduction <add>, %30, %cst_14 [1] : vector<64x128xf32> to vector<64xf32>
    %32 = vector.shape_cast %31 : vector<64xf32> to vector<64x1xf32>
    %33 = arith.addf %27, %32 : vector<64x1xf32>
    %c0_15 = arith.constant 0 : index
    %c0_16 = arith.constant 0 : index
    %34 = vector.load %arg8[%c0_15, %c0_16] : memref<64x1xf32, #tpu.memory_space<vmem>>, vector<64x1xf32>
    tpu.vector_store %arg8[%c0_15, %c0_16], %33 {strides = array<i32>} : memref<64x1xf32, #tpu.memory_space<vmem>>, vector<64x1xf32>,
    %35 = arith.cmpf ogt, %15, %22 : vector<64x1xf32>
    %c0_17 = arith.constant 0 : index
    %c0_18 = arith.constant 0 : index
    %36 = vector.load %arg11[%c0_17, %c0_18] : memref<64x1xi32, #tpu.memory_space<vmem>>, vector<64x1xi32>
    %37 = arith.select %35, %21, %36 : vector<64x1xi1>, vector<64x1xi32>
    %c0_19 = arith.constant 0 : index
    %c0_20 = arith.constant 0 : index
    %38 = vector.load %arg11[%c0_19, %c0_20] : memref<64x1xi32, #tpu.memory_space<vmem>>, vector<64x1xi32>
    tpu.vector_store %arg11[%c0_19, %c0_20], %37 {strides = array<i32>} : memref<64x1xi32, #tpu.memory_space<vmem>>, vector<64x1xi32>,
    %c0_21 = arith.constant 0 : index
    %c0_22 = arith.constant 0 : index
    %39 = vector.load %arg7[%c0_21, %c0_22] : memref<64x1xf32, #tpu.memory_space<vmem>>, vector<64x1xf32>
    tpu.vector_store %arg7[%c0_21, %c0_22], %23 {strides = array<i32>} : memref<64x1xf32, #tpu.memory_space<vmem>>, vector<64x1xf32>,
    %c0_23 = arith.constant 0 : index
    %c0_24 = arith.constant 0 : index
    %40 = vector.load %arg9[%c0_23, %c0_24] : memref<64x1xf32, #tpu.memory_space<vmem>>, vector<64x1xf32>
    %cst_25 = arith.constant dense<0.000000e+00> : vector<64xf32>
    %41 = vector.multi_reduction <add>, %8, %cst_25 [1] : vector<64x128xf32> to vector<64xf32>
    %42 = vector.shape_cast %41 : vector<64xf32> to vector<64x1xf32>
    %43 = arith.addf %40, %42 : vector<64x1xf32>
    %c0_26 = arith.constant 0 : index
    %c0_27 = arith.constant 0 : index
    %44 = vector.load %arg9[%c0_26, %c0_27] : memref<64x1xf32, #tpu.memory_space<vmem>>, vector<64x1xf32>
    tpu.vector_store %arg9[%c0_26, %c0_27], %43 {strides = array<i32>} : memref<64x1xf32, #tpu.memory_space<vmem>>, vector<64x1xf32>,
    %45 = vector.broadcast %9 : vector<64x1xi32> to vector<64x128xi32>
    %46 = arith.cmpi eq, %13, %45 : vector<64x128xi32>
    %47 = arith.extui %46 : vector<64x128xi1> to vector<64x128xi32>
    %48 = arith.sitofp %47 : vector<64x128xi32> to vector<64x128xf32>
    %c0_28 = arith.constant 0 : index
    %c0_29 = arith.constant 0 : index
    %49 = vector.load %arg10[%c0_28, %c0_29] : memref<64x1xf32, #tpu.memory_space<vmem>>, vector<64x1xf32>
    %50 = arith.mulf %8, %48 : vector<64x128xf32>
    %cst_30 = arith.constant dense<0.000000e+00> : vector<64xf32>
    %51 = vector.multi_reduction <add>, %50, %cst_30 [1] : vector<64x128xf32> to vector<64xf32>
    %52 = vector.shape_cast %51 : vector<64xf32> to vector<64x1xf32>
    %53 = arith.addf %49, %52 : vector<64x1xf32>
    %c0_31 = arith.constant 0 : index
    %c0_32 = arith.constant 0 : index
    %54 = vector.load %arg10[%c0_31, %c0_32] : memref<64x1xf32, #tpu.memory_space<vmem>>, vector<64x1xf32>
    tpu.vector_store %arg10[%c0_31, %c0_32], %53 {strides = array<i32>} : memref<64x1xf32, #tpu.memory_space<vmem>>, vector<64x1xf32>,
    %c1_i32 = arith.constant 1 : i32
    %55 = arith.cmpi eq, %arg1, %c1_i32 : i32
    %56 = arith.extui %55 : i1 to i32
    %c0_i32_33 = arith.constant 0 : i32
    %57 = arith.cmpi ne, %56, %c0_i32_33 : i32
    scf.if %57 {
      %c0_34 = arith.constant 0 : index
      %c0_35 = arith.constant 0 : index
      %58 = vector.load %arg7[%c0_34, %c0_35] : memref<64x1xf32, #tpu.memory_space<vmem>>, vector<64x1xf32>
      %c0_36 = arith.constant 0 : index
      %c0_37 = arith.constant 0 : index
      %59 = vector.load %arg8[%c0_36, %c0_37] : memref<64x1xf32, #tpu.memory_space<vmem>>, vector<64x1xf32>
      %60 = math.log %59 : vector<64x1xf32>
      %61 = arith.addf %58, %60 : vector<64x1xf32>
      %c0_38 = arith.constant 0 : index
      %c0_39 = arith.constant 0 : index
      %62 = vector.load %arg10[%c0_38, %c0_39] : memref<64x1xf32, #tpu.memory_space<vmem>>, vector<64x1xf32>
      %63 = arith.subf %61, %62 : vector<64x1xf32>
      %c0_40 = arith.constant 0 : index
      %c0_41 = arith.constant 0 : index
      %64 = vector.load %arg9[%c0_40, %c0_41] : memref<64x1xf32, #tpu.memory_space<vmem>>, vector<64x1xf32>
      %cst_42 = arith.constant 2.560000e+02 : f32
      %65 = vector.broadcast %cst_42 : f32 to vector<64x1xf32>
      %66 = arith.divf %64, %65 : vector<64x1xf32>
      %67 = arith.subf %61, %66 : vector<64x1xf32>
      %cst_43 = arith.constant 0.899999976 : f32
      %68 = vector.broadcast %cst_43 : f32 to vector<64x1xf32>
      %69 = arith.mulf %68, %63 : vector<64x1xf32>
      %cst_44 = arith.constant 1.000000e-01 : f32
      %70 = vector.broadcast %cst_44 : f32 to vector<64x1xf32>
      %71 = arith.mulf %70, %67 : vector<64x1xf32>
      %72 = arith.addf %69, %71 : vector<64x1xf32>
      %c1_i32_45 = arith.constant 1 : i32
      %73 = vector.broadcast %c1_i32_45 : i32 to vector<64x1xi32>
      %74 = arith.cmpi ne, %9, %73 : vector<64x1xi32>
      %75 = arith.extui %74 : vector<64x1xi1> to vector<64x1xi32>
      %76 = arith.sitofp %75 : vector<64x1xi32> to vector<64x1xf32>
      %77 = arith.mulf %72, %76 : vector<64x1xf32>
      %78 = vector.shape_cast %77 : vector<64x1xf32> to vector<1x64x1xf32>
      %cst_46 = arith.constant dense<0.000000e+00> : vector<1xf32>
      %79 = vector.multi_reduction <add>, %78, %cst_46 [1, 2] : vector<1x64x1xf32> to vector<1xf32>
      %80 = vector.shape_cast %79 : vector<1xf32> to vector<1x1x1xf32>
      %81 = vector.extract %80[0, 0, 0] : f32 from vector<1x1x1xf32>
      %c0_47 = arith.constant 0 : index
      %c0_48 = arith.constant 0 : index
      %82 = vector.load %arg11[%c0_47, %c0_48] : memref<64x1xi32, #tpu.memory_space<vmem>>, vector<64x1xi32>
      %83 = arith.cmpi eq, %82, %9 : vector<64x1xi32>
      %84 = arith.andi %83, %74 : vector<64x1xi1>
      %85 = arith.extui %84 : vector<64x1xi1> to vector<64x1xi32>
      %86 = arith.sitofp %85 : vector<64x1xi32> to vector<64x1xf32>
      %87 = vector.shape_cast %86 : vector<64x1xf32> to vector<1x64x1xf32>
      %cst_49 = arith.constant dense<0.000000e+00> : vector<1xf32>
      %88 = vector.multi_reduction <add>, %87, %cst_49 [1, 2] : vector<1x64x1xf32> to vector<1xf32>
      %89 = vector.shape_cast %88 : vector<1xf32> to vector<1x1x1xf32>
      %90 = vector.extract %89[0, 0, 0] : f32 from vector<1x1x1xf32>
      %91 = vector.shape_cast %76 : vector<64x1xf32> to vector<1x64x1xf32>
      %cst_50 = arith.constant dense<0.000000e+00> : vector<1xf32>
      %92 = vector.multi_reduction <add>, %91, %cst_50 [1, 2] : vector<1x64x1xf32> to vector<1xf32>
      %93 = vector.shape_cast %92 : vector<1xf32> to vector<1x1x1xf32>
      %94 = vector.extract %93[0, 0, 0] : f32 from vector<1x1x1xf32>
      %95 = tpu.iota {dimensions = array<i32: 2>} : vector<1x8x128xi32>
      %c0_i32_51 = arith.constant 0 : i32
      %96 = vector.broadcast %c0_i32_51 : i32 to vector<1x8x128xi32>
      %97 = arith.cmpi eq, %95, %96 : vector<1x8x128xi32>
      %c1_i32_52 = arith.constant 1 : i32
      %98 = vector.broadcast %c1_i32_52 : i32 to vector<1x8x128xi32>
      %99 = arith.cmpi eq, %95, %98 : vector<1x8x128xi32>
      %c2_i32 = arith.constant 2 : i32
      %100 = vector.broadcast %c2_i32 : i32 to vector<1x8x128xi32>
      %101 = arith.cmpi eq, %95, %100 : vector<1x8x128xi32>
      %cst_53 = arith.constant 0.000000e+00 : f32
      %102 = vector.broadcast %94 : f32 to vector<1x8x128xf32>
      %103 = vector.broadcast %cst_53 : f32 to vector<1x8x128xf32>
      %104 = arith.select %101, %102, %103 : vector<1x8x128xi1>, vector<1x8x128xf32>
      %105 = vector.broadcast %90 : f32 to vector<1x8x128xf32>
      %106 = arith.select %99, %105, %104 : vector<1x8x128xi1>, vector<1x8x128xf32>
      %107 = vector.broadcast %81 : f32 to vector<1x8x128xf32>
      %108 = arith.select %97, %107, %106 : vector<1x8x128xi1>, vector<1x8x128xf32>
      %c0_54 = arith.constant 0 : index
      %c0_55 = arith.constant 0 : index
      %c0_56 = arith.constant 0 : index
      %109 = vector.load %arg6[%c0_54, %c0_55, %c0_56] : memref<1x8x128xf32, #tpu.memory_space<vmem>>, vector<1x8x128xf32>
      tpu.vector_store %arg6[%c0_54, %c0_55, %c0_56], %108 {strides = array<i32>} : memref<1x8x128xf32, #tpu.memory_space<vmem>>, vector<1x8x128xf32>,
    } else {
    }
    return
  }
  func.func @transform_0(%arg0: i32, %arg1: i32) -> (i32, i32) {
    %c0_i32 = arith.constant 0 : i32
    %c0_i32_0 = arith.constant 0 : i32
    return %arg0, %c0_i32 : i32, i32
  }
  func.func @transform_1(%arg0: i32, %arg1: i32) -> (i32, i32) {
    %c0_i32 = arith.constant 0 : i32
    %c0_i32_0 = arith.constant 0 : i32
    return %c0_i32, %arg1 : i32, i32
  }
  func.func @transform_2(%arg0: i32, %arg1: i32) -> (i32, i32) {
    %c0_i32 = arith.constant 0 : i32
    %c0_i32_0 = arith.constant 0 : i32
    return %c0_i32, %arg1 : i32, i32
  }
  func.func @transform_3(%arg0: i32, %arg1: i32) -> (i32, i32) {
    %c0_i32 = arith.constant 0 : i32
    %c0_i32_0 = arith.constant 0 : i32
    return %arg0, %c0_i32 : i32, i32
  }
  func.func @transform_4(%arg0: i32, %arg1: i32) -> (i32, i32, i32) {
    %c0_i32 = arith.constant 0 : i32
    %c0_i32_0 = arith.constant 0 : i32
    %c0_i32_1 = arith.constant 0 : i32
    return %arg0, %c0_i32, %c0_i32_0 : i32, i32, i32
  }
}

</mosaic_0001>

<bundles_post_ra>
// kernel: tpu_custom_call.1
= control target key start
LH: loop header
LB: loop body
LE: loop exit
PB: predicated region body
PF: predicated region fallthrough
CT: control target
= control target key end

     0   :  { %s2648_s0 = inlined_call_operand.vmem [shape: bf16[128,64], index: 0, kind: input, shape index: {}]   ;;  %s2649_s1 = inlined_call_operand.vmem [shape: bf16[64,256], index: 1, kind: input, shape index: {}]   ;;  %s2650_s2 = inlined_call_operand.vmem [shape: f32[1,256], index: 2, kind: input, shape index: {}]   ;;  %s2651_s3 = inlined_call_operand.vmem [shape: s32[128,1], index: 3, kind: input, shape index: {}]   ;;  %s2652_s4 = inlined_call_operand.hbm [shape: f32[2,8,128], index: 4, kind: output, shape index: {}]  }
   0x1   :  { %2677 = sst [smem:[#allocation26_spill]] %s2649_s1 }
   0x2   :  { %9 = vsyncpa [#allocation9], 0 }
   0x3   :  { %11 = vsyncpa [#allocation9 + $0x1], 0  ;;  %s1788_s15 = smov 0   ;;  %s1790_s16 = smov 0  }
   0x4   :  { %s1792_s17 = smov 0   ;;  %s1794_s18 = smov 0  }
   0x5   :  { %s1796_s19 = smov 0   ;;  %s1798_s20 = smov 0  }
   0x6   :  { %s1800_s21 = smov 0   ;;  %s1802_s22 = smov 0  }
   0x7   :  { %s1804_s23 = smov 0   ;;  %s1806_s24 = smov 0  }
   0x8 LB: > { %2678 = sst [smem:[#allocation11_spill]] %s1746_s22  ;;  %s1400_s25 = sadd.s32 4294967295, %s1754_s24   ;;  %s1754_s24 = sphi %s1806_s24, %s17_s24   ;;  %s1750_s23 = sphi %s1804_s23, %s2726_s23   ;;  %s1746_s22 = sphi %s1802_s22, %s2725_s22   ;;  %s1742_s21 = sphi %s1800_s21, %s2724_s21   ;;  %s1738_s20 = sphi %s1798_s20, %s2723_s20   ;;  %s1734_s19 = sphi %s1796_s19, %s2731_s19   ;;  %s1730_s18 = sphi %s1794_s18, %s2730_s18   ;;  %s1726_s17 = sphi %s1792_s17, %s2729_s17   ;;  %s1722_s16 = sphi %s1790_s16, %s2728_s16   ;;  %s1718_s15 = sphi %s1788_s15, %s2727_s15  }
   0x9   : > { %2679 = sst [smem:[#allocation12_spill]] %s1750_s23  ;;  %s1401_s26 = sadd.s32 4294967294, %s1754_s24  }
   0xa   : > { %s26_s27 = sadd.s32 1, %s1746_s22  ;;  %s29_s28 = sadd.s32 1, %s1750_s23 }
   0xb   : > { %p27_p0 = scmp.ge.s32.totalorder %s26_s27, 2  ;;  %s62_s29 = sadd.s32 1, %s1734_s19 }
   0xc   : > { %p69_p1 = scmp.ne.s32.totalorder %s1734_s19, %s1730_s18  ;;  %p70_p2 = scmp.eq.s32.totalorder %s1754_s24, 0 }
   0xd   : > { %s2733_s27 = smov (%p27_p0, %s26_s27), 0  ;;  %s2735_s28 = smov (!%p27_p0, %s29_s28), %s1750_s23 }
   0xe   : > { %2680 = sst [smem:[#allocation13_spill]] %s2733_s27  ;;  %s59_s30 = ssub.s32 %s1746_s22, %s2733_s27 }
   0xf   : > { %p1851_p3 = por %p70_p2, %p69_p1  ;;  %p31_p4 = scmp.ge.s32.totalorder %s2735_s28, 2 }
  0x10   : > { %p60_p5 = scmp.eq.s32.totalorder %s59_s30, 0  ;;  %s140_s6 = sadd.s32 1, %s1726_s17 }
  0x11   : > { %p150_p6 = scmp.ne.s32.totalorder %s1726_s17, %s1722_s16  ;;  %s2737_s28 = smov (%p31_p4, %s2735_s28), 0 }
  0x12   : > { %2682 = sst [smem:[#allocation14_spill]] %s2737_s28  ;;  %s137_s8 = ssub.s32 %s1750_s23, %s2737_s28 }
  0x13   : > { %s1861_s7 = scalar_select %p60_p5, %s1734_s19, %s62_s29  }
  0x14   : > { %p151_p7 = scmp.eq.s32.totalorder %s1400_s25, 3  ;;  %p138_p8 = scmp.eq.s32.totalorder %s137_s8, 0 }
  0x15   : > { %2683 = sst [smem:[#allocation15_spill]] %s1861_s7  ;;  %p156_p9 = scmp.ne.s32.totalorder %s1722_s16, %s1718_s15 }
  0x16   : > { %p1867_p10 = por %p151_p7, %p150_p6  ;;  %p157_p11 = scmp.eq.s32.totalorder %s1401_s26, 3 }
  0x17   : > { %s1872_s10 = scalar_select %p138_p8, %s1726_s17, %s140_s6  }
  0x18   : > { %p1874_p12 = por %p157_p11, %p156_p9  ;;  %p1403_p13 = scmp.ge.s32.totalorder %s1754_s24, 4 }
  0x1a   : > { %173 = sbr.rel (%p1403_p13) target bundleno = 46 (0x2e), region = 16 }
  0x1f   : > { %185 = sbr.rel (!%p1851_p3) target bundleno = 46 (0x2e), region = 24  ;;  %s187_s12 = sand.u32 (%p1851_p3), 1, %s1734_s19  }
  0x20   : > { %s1405_s13 = sshll.u32 (%p1851_p3), %s1746_s22, 2  ;;  %s1404_s14 = sshll.u32 (%p1851_p3), %s187_s12, 5 }
  0x21   : > { %s2686_s1 = sld [smem:[#allocation26_spill]] (%p1851_p3)  ;;  %s189_s30 = scalar_lea.vmem (%p1851_p3), [#allocation7], %s1404_s14 }
  0x27   : > { %s191_s26 = scalar_lea.vmem %s2686_s1, %s1405_s13 }
  0x28   : > { %v208_v0 = vld [vmem:[%s191_s26] sm:$0xf]  ;;  %v210_v1 = vld [vmem:[%s191_s26 + $0x8] sm:$0xf]  ;;  %v212_v2 = vld [vmem:[%s191_s26 + $0x10] sm:$0xf] }
  0x29   : > { %209 = vst [vmem:[%s189_s30] sm:$0xf] %v208_v0  ;;  %211 = vst [vmem:[%s189_s30 + $0x4] sm:$0xf] %v210_v1  ;;  %v214_v3 = vld [vmem:[%s191_s26 + $0x18] sm:$0xf] }
  0x2a   : > { %v216_v4 = vld [vmem:[%s191_s26 + $0x20] sm:$0xf]  ;;  %213 = vst [vmem:[%s189_s30 + $0x8] sm:$0xf] %v212_v2  ;;  %215 = vst [vmem:[%s189_s30 + $0xc] sm:$0xf] %v214_v3 }
  0x2b   : > { %217 = vst [vmem:[%s189_s30 + $0x10] sm:$0xf] %v216_v4  ;;  %v218_v5 = vld [vmem:[%s191_s26 + $0x28] sm:$0xf]  ;;  %v220_v6 = vld [vmem:[%s191_s26 + $0x30] sm:$0xf] }
  0x2c   : > { %v222_v7 = vld [vmem:[%s191_s26 + $0x38] sm:$0xf]  ;;  %219 = vst [vmem:[%s189_s30 + $0x14] sm:$0xf] %v218_v5  ;;  %221 = vst [vmem:[%s189_s30 + $0x18] sm:$0xf] %v220_v6 }
  0x2d   : > { %223 = vst [vmem:[%s189_s30 + $0x1c] sm:$0xf] %v222_v7 }
  0x2e PF: > { %p1406_p0 = scmp.ge.s32.totalorder %s1754_s24, 1  ;;  %p277_p1 = scmp.lt.s32.totalorder %s1754_s24, 5 }
  0x30   : > { %p278_p2 = pnand %p1406_p0, %p277_p1 }
  0x32   : > { %281 = sbr.rel (%p278_p2) target bundleno = 1093 (0x445), region = 73 }
  0x37   : > { %s284_s5 = sand.u32 1, %s1730_s18   ;;  %s2654_s6 = sand.u32 1, %s1722_s16  }
  0x38   : > { %s1407_s8 = sshll.u32 %s284_s5, 5  ;;  %s1892_s12 = sshll.u32 %s2654_s6, 3 }
  0x39   : > { %s1409_s13 = sshll.u32 %s1742_s21, 3  ;;  %p328_p3 = scmp.lt.s32.totalorder %s1738_s20, 1 }
  0x3a   : > { %p323_p4 = scmp.lt.s32.totalorder %s1409_s13, 15  ;;  %s1913_s22 = scalar_lea.vmem [#allocation7], %s1407_s8 }
  0x3b   : > { %s1897_s14 = scalar_select %p328_p3, %s1738_s20, 1 }
  0x3c   : > { %s2739_s13 = smov (!%p323_p4, %s1409_s13), 15  ;;  %s321_s7 = scalar_lea.vmem [#allocation8], %s1892_s12 }
  0x3d   : > { %s330_s26 = scalar_lea.vmem %s2650_s2, %s1897_s14  ;;  %s1410_s30 = sshll.u32 %s2739_s13, 2 }
  0x3e   : > { %s1412_s1 = sshll.u32 %s2739_s13, 3  ;;  %s1906_s5 = scalar_lea.vmem %s2648_s0, %s1410_s30 }
  0x3f   : > { %s1911_s23 = scalar_lea.vmem %s2651_s3, %s1412_s1  ;;  %p1413_p5 = scmp.ne.s32.totalorder %s1738_s20, 0 }
  0x41   : > { %341 = sbr.rel (%p1413_p5) target bundleno = 91 (0x5b), region = 81 }
  0x46   : > { %vm342_vm0 = vcmask 7168   ;;  %v1756_v8 = vmov -inf   ;;  %v1757_v9 = vmov 0.0   ;;  %v1758_v10 = vmov 0  }
  0x47   : > { %343 = vst.msk [vmem:[#allocation2] sm:$0xff] %vm342_vm0, %v1756_v8  ;;  %344 = vst.msk [vmem:[#allocation2 + $0x8] sm:$0xff] %vm342_vm0, %v1756_v8 }
  0x48   : > { %345 = vst.msk [vmem:[#allocation2 + $0x10] sm:$0xff] %vm342_vm0, %v1756_v8  ;;  %346 = vst.msk [vmem:[#allocation2 + $0x18] sm:$0xff] %vm342_vm0, %v1756_v8 }
  0x49   : > { %347 = vst.msk [vmem:[#allocation2 + $0x20] sm:$0xff] %vm342_vm0, %v1756_v8  ;;  %348 = vst.msk [vmem:[#allocation2 + $0x28] sm:$0xff] %vm342_vm0, %v1756_v8 }
  0x4a   : > { %349 = vst.msk [vmem:[#allocation2 + $0x30] sm:$0xff] %vm342_vm0, %v1756_v8  ;;  %350 = vst.msk [vmem:[#allocation2 + $0x38] sm:$0xff] %vm342_vm0, %v1756_v8 }
  0x4b   : > { %351 = vst.msk [vmem:[#allocation3] sm:$0xff] %vm342_vm0, %v1757_v9  ;;  %352 = vst.msk [vmem:[#allocation3 + $0x8] sm:$0xff] %vm342_vm0, %v1757_v9 }
  0x4c   : > { %353 = vst.msk [vmem:[#allocation3 + $0x10] sm:$0xff] %vm342_vm0, %v1757_v9  ;;  %354 = vst.msk [vmem:[#allocation3 + $0x18] sm:$0xff] %vm342_vm0, %v1757_v9 }
  0x4d   : > { %355 = vst.msk [vmem:[#allocation3 + $0x20] sm:$0xff] %vm342_vm0, %v1757_v9  ;;  %356 = vst.msk [vmem:[#allocation3 + $0x28] sm:$0xff] %vm342_vm0, %v1757_v9 }
  0x4e   : > { %357 = vst.msk [vmem:[#allocation3 + $0x30] sm:$0xff] %vm342_vm0, %v1757_v9  ;;  %358 = vst.msk [vmem:[#allocation3 + $0x38] sm:$0xff] %vm342_vm0, %v1757_v9 }
  0x4f   : > { %359 = vst.msk [vmem:[#allocation4] sm:$0xff] %vm342_vm0, %v1757_v9  ;;  %360 = vst.msk [vmem:[#allocation4 + $0x8] sm:$0xff] %vm342_vm0, %v1757_v9 }
  0x50   : > { %361 = vst.msk [vmem:[#allocation4 + $0x10] sm:$0xff] %vm342_vm0, %v1757_v9  ;;  %362 = vst.msk [vmem:[#allocation4 + $0x18] sm:$0xff] %vm342_vm0, %v1757_v9 }
  0x51   : > { %363 = vst.msk [vmem:[#allocation4 + $0x20] sm:$0xff] %vm342_vm0, %v1757_v9  ;;  %364 = vst.msk [vmem:[#allocation4 + $0x28] sm:$0xff] %vm342_vm0, %v1757_v9 }
  0x52   : > { %365 = vst.msk [vmem:[#allocation4 + $0x30] sm:$0xff] %vm342_vm0, %v1757_v9  ;;  %366 = vst.msk [vmem:[#allocation4 + $0x38] sm:$0xff] %vm342_vm0, %v1757_v9 }
  0x53   : > { %367 = vst.msk [vmem:[#allocation5] sm:$0xff] %vm342_vm0, %v1757_v9  ;;  %368 = vst.msk [vmem:[#allocation5 + $0x8] sm:$0xff] %vm342_vm0, %v1757_v9 }
  0x54   : > { %369 = vst.msk [vmem:[#allocation5 + $0x10] sm:$0xff] %vm342_vm0, %v1757_v9  ;;  %370 = vst.msk [vmem:[#allocation5 + $0x18] sm:$0xff] %vm342_vm0, %v1757_v9 }
  0x55   : > { %371 = vst.msk [vmem:[#allocation5 + $0x20] sm:$0xff] %vm342_vm0, %v1757_v9  ;;  %372 = vst.msk [vmem:[#allocation5 + $0x28] sm:$0xff] %vm342_vm0, %v1757_v9 }
  0x56   : > { %373 = vst.msk [vmem:[#allocation5 + $0x30] sm:$0xff] %vm342_vm0, %v1757_v9  ;;  %374 = vst.msk [vmem:[#allocation5 + $0x38] sm:$0xff] %vm342_vm0, %v1757_v9 }
  0x57   : > { %375 = vst.msk [vmem:[#allocation6] sm:$0xff] %vm342_vm0, %v1758_v10  ;;  %376 = vst.msk [vmem:[#allocation6 + $0x8] sm:$0xff] %vm342_vm0, %v1758_v10 }
  0x58   : > { %377 = vst.msk [vmem:[#allocation6 + $0x10] sm:$0xff] %vm342_vm0, %v1758_v10  ;;  %378 = vst.msk [vmem:[#allocation6 + $0x18] sm:$0xff] %vm342_vm0, %v1758_v10 }
  0x59   : > { %379 = vst.msk [vmem:[#allocation6 + $0x20] sm:$0xff] %vm342_vm0, %v1758_v10  ;;  %380 = vst.msk [vmem:[#allocation6 + $0x28] sm:$0xff] %vm342_vm0, %v1758_v10 }
  0x5a   : > { %381 = vst.msk [vmem:[#allocation6 + $0x30] sm:$0xff] %vm342_vm0, %v1758_v10  ;;  %382 = vst.msk [vmem:[#allocation6 + $0x38] sm:$0xff] %vm342_vm0, %v1758_v10 }
  0x5b PF: > { %v1590_v11 = vld [vmem:[%s1913_s22 + $0x18] sm:$0xff]   ;;  %v1591_v12 = vld [vmem:[%s1913_s22 + $0x10] sm:$0xff]   ;;  %v1592_v13 = vld [vmem:[%s1913_s22 + $0x8] sm:$0xff]   ;;  %vm450_vm1 = vcmask 523264   ;;  %v1759_v16 = vmov 0   ;;  %vm829_vm2 = vcmask 7168  }
  0x5c   : > { %1465 = vmatprep.subr.bf16.mxu0 %v1590_v11  ;;  %1481 = vmatprep.subr.bf16.mxu1 %v1590_v11  ;;  %v1594_v14 = vld [vmem:[%s1906_s5] sm:$0xff]   ;;  %v1595_v15 = vld [vmem:[%s1906_s5 + $0x10] sm:$0xff]   ;;  %v1970_v19 = vld [vmem:[%s1911_s23 + $0x8] sm:$0xff]  ;;  %s1427_s27 = sshll.u32 %s1738_s20, 7  ;;  %p1436_p6 = scmp.ne.s32.totalorder %s1738_s20, 1 }
  0x5d   : > { %1466 = vmatpush3.bf16.msra.mxu0 %v1590_v11  ;;  %1485 = vmatpush3.bf16.msra.mxu1 %v1590_v11  ;;  %v1593_v17 = vld [vmem:[%s1913_s22] sm:$0xff]   ;;  %2688 = vst [vmem:[#allocation17_spill] sm:$0xff] %v1970_v19  ;;  %v1973_v20 = vld [vmem:[%s1911_s23 + $0x10] sm:$0xff]  ;;  %v1977_v21 = vld [vmem:[%s1911_s23 + $0x18] sm:$0xff] }
  0x5e   : > { %1467 = vmatprep.subr.bf16.mxu0 %v1591_v12  ;;  %1482 = vmatprep.subr.bf16.mxu1 %v1591_v12  ;;  %v1965_v18 = vld [vmem:[%s1911_s23] sm:$0xff]  ;;  %2689 = vst [vmem:[#allocation18_spill] sm:$0xff] %v1973_v20  ;;  %2690 = vst [vmem:[#allocation19_spill] sm:$0xff] %v1977_v21  ;;  %v1596_v22 = vld [vmem:[%s1906_s5 + $0x8] sm:$0xff]  }
  0x5f   : > { %1588 = vset.pattern.permute.xlu1 %v1759_v16  ;;  %1589 = vset.pattern.permute.xlu0 %v1759_v16  ;;  %2687 = vst [vmem:[#allocation16_spill] sm:$0xff] %v1965_v18  ;;  %v1597_v23 = vld [vmem:[%s1906_s5 + $0x18] sm:$0xff]   ;;  %v1983_v24 = vld [vmem:[%s1911_s23 + $0x20] sm:$0xff]  ;;  %v1987_v25 = vld [vmem:[%s1911_s23 + $0x28] sm:$0xff] }
  0x60   : > { %1473 = vmatprep.mubr.msk.bf16.mxu0 %vm450_vm1, %v1594_v14  ;;  %1477 = vmatprep.mubr.msk.bf16.mxu1 %vm450_vm1, %v1595_v15  ;;  %2691 = vst [vmem:[#allocation20_spill] sm:$0xff] %v1983_v24  ;;  %2692 = vst [vmem:[#allocation21_spill] sm:$0xff] %v1987_v25  ;;  %v1993_v26 = vld [vmem:[%s1911_s23 + $0x30] sm:$0xff]  ;;  %v1414_v27 = vld [vmem:[%s330_s26] ss:$0 sm:$0xff] }
  0x61   : > { %1468 = vmatpush3.bf16.msra.mxu0 %v1591_v12  ;;  %1486 = vmatpush3.bf16.msra.mxu1 %v1591_v12  ;;  %2693 = vst [vmem:[#allocation22_spill] sm:$0xff] %v1993_v26  ;;  %v2040_v51 = vld [vmem:[#allocation2 + $0x30] sm:$0xff]  ;;  %v2060_v57 = vld [vmem:[#allocation2 + $0x18] sm:$0xff]  ;;  %v2066_v59 = vld [vmem:[#allocation2] sm:$0xff] }
  0x62   : > { %1469 = vmatprep.subr.bf16.mxu0 %v1592_v13  ;;  %1483 = vmatprep.subr.bf16.mxu1 %v1592_v13  ;;  %v2042_v52 = vld [vmem:[#allocation2 + $0x10] sm:$0xff]  ;;  %v2089_v1 = vld [vmem:[#allocation2 + $0x38] sm:$0xff]  ;;  %v2095_v3 = vld [vmem:[#allocation2 + $0x20] sm:$0xff] }
  0x63   : > { %919 = vperm.xlu1 %1588, %v1965_v18   ;;  %922 = vperm.xlu0 %1589, %v1970_v19   ;;  %v2119_v9 = vld [vmem:[#allocation2 + $0x28] sm:$0xff]  ;;  %v2251_v19 = vld [vmem:[%s1911_s23 + $0x38] sm:$0xff] }
  0x64   : > { %v2125_v11 = vld [vmem:[#allocation2 + $0x8] sm:$0xff]  ;;  %2696 = vst [vmem:[#allocation25_spill] sm:$0xff] %v2251_v19 }
  0x65   : > { %1470 = vmatpush3.bf16.msra.mxu0 %v1592_v13  ;;  %1487 = vmatpush3.bf16.msra.mxu1 %v1592_v13 }
  0x66   : > { %1471 = vmatprep.subr.bf16.mxu0 %v1593_v17  ;;  %1484 = vmatprep.subr.bf16.mxu1 %v1593_v17 }
  0x67   : > { %925 = vperm.xlu1 %1588, %v1973_v20   ;;  %928 = vperm.xlu0 %1589, %v1977_v21  }
  0x69   : > { %1472 = vmatpush3.bf16.msra.mxu0 %v1593_v17  ;;  %1488 = vmatpush3.bf16.msra.mxu1 %v1593_v17 }
  0x6b   : > { %931 = vperm.xlu1 %1588, %v1983_v24   ;;  %934 = vperm.xlu0 %1589, %v1987_v25  }
  0x6c   : > { %1474 = vmatmul.mubr.msk.bf16.vlgmr.msra.gmra.mxu0 %vm450_vm1, %v1596_v22  ;;  %1478 = vmatmul.mubr.msk.bf16.vlgmr.msra.gmra.mxu1 %vm450_vm1, %v1597_v23  ;;  %v536_v23 = vlaneseq }
  0x6f   : > { %937 = vperm.xlu1 %1588, %v1993_v26  }
  0xde   : > { %v2026_v44 = vpop.permute.xlu1 %919  ;;  %v2030_v46 = vpop.permute.xlu0 %922 }
  0xe2   : > { %v2028_v45 = vpop.permute.xlu1 %925  ;;  %v2034_v48 = vpop.permute.xlu0 %928 }
  0xe6   : > { %v2032_v47 = vpop.permute.xlu1 %931  ;;  %v2038_v50 = vpop.permute.xlu0 %934 }
  0xea   : > { %v2036_v49 = vpop.permute.xlu1 %937 }
 0x12c   : > { %v1475_v28 = vpop.f32.mrf.mxu0  ;;  %v1479_v29 = vpop.f32.mrf.mxu1 }
 0x12d   : > { %v2002_v30 = vadd.f32 %v1475_v28, %v1414_v27  ;;  %v2004_v31 = vadd.f32 %v1479_v29, %v1414_v27  ;;  %v539_v28 = vstv %s1427_s27 }
 0x12e   : > { %v497_v32 = vpop.f32.mrf.mxu0  ;;  %v513_v33 = vpop.f32.mrf.mxu1 }
 0x12f   : > { %553 = vmax.xlane.f32.xlu0 %v2004_v31  ;;  %545 = vmax.xlane.f32.xlu1 %v2002_v30  ;;  %v2008_v35 = vadd.f32 %v1414_v27, %v497_v32  ;;  %v2014_v38 = vadd.f32 %v1414_v27, %v513_v33 }
 0x130   : > { %v1476_v34 = vpop.f32.mrf.mxu0  ;;  %v1480_v37 = vpop.f32.mrf.mxu1 }
 0x131   : > { %v2010_v36 = vadd.f32 %v1476_v34, %v1414_v27  ;;  %v2016_v39 = vadd.f32 %v1480_v37, %v1414_v27 }
 0x132   : > { %v500_v40 = vpop.f32.mrf.mxu0  ;;  %v516_v41 = vpop.f32.mrf.mxu1 }
 0x133   : > { %547 = vmax.xlane.f32.xlu1 %v2010_v36  ;;  %541 = vmax.xlane.f32.xlu0 %v2008_v35  ;;  %v2020_v42 = vadd.f32 %v1414_v27, %v500_v40  ;;  %v2022_v43 = vadd.f32 %v1414_v27, %v516_v41  ;;  %v2155_v27 = vand.u32 127, %v536_v23 }
 0x135   : > { %2695 = vst [vmem:[#allocation24_spill] sm:$0xff] %v2155_v27  ;;  %v2161_v29 = vadd.s32 %v539_v28, %v2155_v27 }
 0x137   : > { %555 = vmax.xlane.f32.xlu1 %v2016_v39  ;;  %549 = vmax.xlane.f32.xlu0 %v2014_v38  ;;  %vm943_vm1 = vcmp.eq.s32.totalorder %v2161_v29, %v2030_v46 }
 0x13b   : > { %551 = vmax.xlane.f32.xlu1 %v2022_v43  ;;  %543 = vmax.xlane.f32.xlu0 %v2020_v42 }
 0x1b8   : > { %v2044_v53 = vpop.xlane.xlu0 %553  ;;  %v2046_v54 = vpop.xlane.xlu1 %545 }
 0x1b9   : > { %v2050_v55 = vmax.f32 %v2040_v51, %v2044_v53  ;;  %vm844_vm3 = vcmp.gt.f32.partialorder %v2044_v53, %v2040_v51  ;;  %v2056_v56 = vmax.f32 %v2042_v52, %v2046_v54  ;;  %vm840_vm4 = vcmp.gt.f32.partialorder %v2046_v54, %v2042_v52 }
 0x1ba   : > { %vm559_vm9 = vcmp.eq.f32.partialorder %v2002_v30, %v2046_v54  ;;  %vm563_vm10 = vcmp.eq.f32.partialorder %v2004_v31, %v2044_v53 }
 0x1bb   : > { %876 = vst.msk [vmem:[#allocation2 + $0x30] sm:$0xff] %vm829_vm2, %v2050_v55  ;;  %872 = vst.msk [vmem:[#allocation2 + $0x10] sm:$0xff] %vm829_vm2, %v2056_v56  ;;  %753 = vperm.xlu1 %1588, %v2056_v56   ;;  %v2165_v32 = vsel %vm559_vm9, %v2161_v29, 256  ;;  %v2171_v34 = vsel %vm563_vm10, %v2161_v29, 256  ;;  %vm945_vm9 = vcmp.eq.s32.totalorder %v2161_v29, %v2034_v48  ;;  %vm947_vm10 = vcmp.eq.s32.totalorder %v2161_v29, %v2038_v50 }
 0x1bc   : > { %v2073_v61 = vpop.xlane.xlu1 %547  ;;  %v2075_v62 = vpop.xlane.xlu0 %541  ;;  %v602_v33 = vshra.s32 %v2165_v32, 16  ;;  %v658_v40 = vshra.s32 %v2171_v34, 16 }
 0x1bd   : > { %v2079_v63 = vmax.f32 %v2060_v57, %v2073_v61  ;;  %vm841_vm5 = vcmp.gt.f32.partialorder %v2073_v61, %v2060_v57  ;;  %v2085_v0 = vmax.f32 %v2066_v59, %v2075_v62  ;;  %vm838_vm6 = vcmp.gt.f32.partialorder %v2075_v62, %v2066_v59 }
 0x1be   : > { %vm557_vm11 = vcmp.eq.f32.partialorder %v2008_v35, %v2075_v62  ;;  %v2175_v37 = vcvt.s32.f32 %v602_v33  ;;  %v2184_v23 = vcvt.s32.f32 %v658_v40  ;;  %vm560_vm13 = vcmp.eq.f32.partialorder %v2010_v36, %v2073_v61 }
 0x1bf   : > { %873 = vst.msk [vmem:[#allocation2 + $0x18] sm:$0xff] %vm829_vm2, %v2079_v63  ;;  %870 = vst.msk [vmem:[#allocation2] sm:$0xff] %vm829_vm2, %v2085_v0  ;;  %773 = vperm.xlu1 %1588, %v2050_v55   ;;  %743 = vperm.xlu0 %1589, %v2085_v0   ;;  %v2179_v41 = vsel %vm557_vm11, %v2161_v29, 256  ;;  %v2197_v2 = vsel %vm560_vm13, %v2161_v29, 256  ;;  %vm942_vm11 = vcmp.eq.s32.totalorder %v2161_v29, %v2026_v44 }
 0x1c0   : > { %v2103_v5 = vpop.xlane.xlu1 %555  ;;  %v2105_v6 = vpop.xlane.xlu0 %549  ;;  %v574_v28 = vshra.s32 %v2179_v41, 16  ;;  %v616_v4 = vshra.s32 %v2197_v2, 16  ;;  %vm946_vm13 = vcmp.eq.s32.totalorder %v2161_v29, %v2032_v47 }
 0x1c1   : > { %v2109_v7 = vmax.f32 %v2089_v1, %v2103_v5  ;;  %vm845_vm7 = vcmp.gt.f32.partialorder %v2103_v5, %v2089_v1  ;;  %v2115_v8 = vmax.f32 %v2095_v3, %v2105_v6  ;;  %vm842_vm8 = vcmp.gt.f32.partialorder %v2105_v6, %v2095_v3 }
 0x1c2   : > { %vm561_vm12 = vcmp.eq.f32.partialorder %v2014_v38, %v2105_v6  ;;  %v2193_v33 = vcvt.s32.f32 %v574_v28  ;;  %vm564_vm14 = vcmp.eq.f32.partialorder %v2016_v39, %v2103_v5  ;;  %v2211_v28 = vcvt.s32.f32 %v616_v4  ;;  %v851_v5 = vld [vmem:[#allocation6 + $0x28] sm:$0xff] }
 0x1c3   : > { %877 = vst.msk [vmem:[#allocation2 + $0x38] sm:$0xff] %vm829_vm2, %v2109_v7  ;;  %874 = vst.msk [vmem:[#allocation2 + $0x20] sm:$0xff] %vm829_vm2, %v2115_v8  ;;  %763 = vperm.xlu1 %1588, %v2115_v8   ;;  %v2188_v17 = vsel %vm561_vm12, %v2161_v29, 256  ;;  %v2206_v22 = vsel %vm564_vm14, %v2161_v29, 256  ;;  %vm944_vm12 = vcmp.eq.s32.totalorder %v2161_v29, %v2028_v45  ;;  %vm948_vm14 = vcmp.eq.s32.totalorder %v2161_v29, %v2036_v49 }
 0x1c4   : > { %v2132_v13 = vpop.xlane.xlu1 %551  ;;  %v2134_v14 = vpop.xlane.xlu0 %543  ;;  %v630_v10 = vshra.s32 %v2188_v17, 16  ;;  %v672_v12 = vshra.s32 %v2206_v22, 16 }
 0x1c5   : > { %2694 = vst [vmem:[#allocation23_spill] sm:$0xff] %v2132_v13  ;;  %v2138_v15 = vmax.f32 %v2119_v9, %v2132_v13  ;;  %v2142_v16 = vmax.f32 %v2125_v11, %v2134_v14  ;;  %vm558_vm15 = vcmp.eq.f32.partialorder %v2020_v42, %v2134_v14  ;;  %vm562_vm0 = vcmp.eq.f32.partialorder %v2022_v43, %v2132_v13 }
 0x1c6   : > { %v2202_v40 = vcvt.s32.f32 %v630_v10  ;;  %v2215_v58 = vsel %vm558_vm15, %v2161_v29, 256  ;;  %v2220_v10 = vcvt.s32.f32 %v672_v12  ;;  %v2224_v27 = vsel %vm562_vm0, %v2161_v29, 256 }
 0x1c7   : > { %875 = vst.msk [vmem:[#allocation2 + $0x28] sm:$0xff] %vm829_vm2, %v2138_v15  ;;  %871 = vst.msk [vmem:[#allocation2 + $0x8] sm:$0xff] %vm829_vm2, %v2142_v16  ;;  %758 = vperm.xlu1 %1588, %v2079_v63   ;;  %v588_v60 = vshra.s32 %v2215_v58, 16  ;;  %v644_v26 = vshra.s32 %v2224_v27, 16 }
 0x1c9   : > { %v2227_v4 = vcvt.s32.f32 %v588_v60  ;;  %v2232_v25 = vcvt.s32.f32 %v644_v26  ;;  %v1760_v60 = vmov 0.0  }
 0x1ca   : > { %v1429_v12 = vsel %vm943_vm1, 1.0, %v1760_v60  ;;  %v1431_v24 = vsel %vm945_vm9, 1.0, %v1760_v60  ;;  %v1433_v21 = vsel %vm947_vm10, 1.0, %v1760_v60  ;;  %v1430_v44 = vsel %vm944_vm12, 1.0, %v1760_v60 }
 0x1cb   : > { %778 = vperm.xlu1 %1588, %v2109_v7   ;;  %v975_v26 = vmul.f32 %v1429_v12, %v2020_v42  ;;  %v977_v46 = vmul.f32 %v1431_v24, %v2010_v36  ;;  %v979_v20 = vmul.f32 %v1433_v21, %v2022_v43  ;;  %v1428_v21 = vsel %vm942_vm11, 1.0, %v1760_v60 }
 0x1cc   : > { %v976_v45 = vmul.f32 %v1430_v44, %v2002_v30 }
 0x1cf   : > { %748 = vperm.xlu1 %1588, %v2142_v16  }
 0x1d3   : > { %768 = vperm.xlu1 %1588, %v2138_v15  }
 0x1de   : > { %605 = vmin.xlane.f32.xlu0 %v2175_v37 }
 0x1e2   : > { %661 = vmin.xlane.f32.xlu0 %v2184_v23 }
 0x1e6   : > { %577 = vmin.xlane.f32.xlu0 %v2193_v33 }
 0x1ea   : > { %633 = vmin.xlane.f32.xlu0 %v2202_v40 }
 0x1ee   : > { %619 = vmin.xlane.f32.xlu0 %v2211_v28 }
 0x1f2   : > { %675 = vmin.xlane.f32.xlu0 %v2220_v10 }
 0x1f6   : > { %591 = vmin.xlane.f32.xlu0 %v2227_v4 }
 0x1f7   : > { %888 = vadd.xlane.f32.xlu1 %v2020_v42 }
 0x1fa   : > { %647 = vmin.xlane.f32.xlu0 %v2232_v25 }
 0x1fb   : > { %892 = vadd.xlane.f32.xlu1 %v2010_v36 }
 0x1ff   : > { %896 = vadd.xlane.f32.xlu1 %v2022_v43 }
 0x203   : > { %900 = vadd.xlane.f32.xlu1 %v2016_v39 }
 0x207   : > { %984 = vadd.xlane.f32.xlu1 %v975_v26 }
 0x20b   : > { %988 = vadd.xlane.f32.xlu1 %v977_v46  ;;  %v974_v46 = vmul.f32 %v1428_v21, %v2008_v35 }
 0x20f   : > { %992 = vadd.xlane.f32.xlu1 %v979_v20 }
 0x210   : > { %940 = vperm.xlu0 %1589, %v2251_v19  }
 0x22f   : > { %886 = vadd.xlane.f32.xlu0 %v2008_v35 }
 0x233   : > { %890 = vadd.xlane.f32.xlu0 %v2002_v30 }
 0x236   : > { %v754_v48 = vpop.permute.xlu1 %753 }
 0x237   : > { %v783_v24 = vsub.f32 %v2002_v30, %v754_v48  ;;  %894 = vadd.xlane.f32.xlu0 %v2014_v38 }
 0x239   : > { %v793_v50 = vmul.f32 1.442695, %v783_v24 }
 0x23a   : > { %v774_v12 = vpop.permute.xlu1 %773  ;;  %v744_v30 = vpop.permute.xlu0 %743 }
 0x23b   : > { %v787_v20 = vsub.f32 %v2004_v31, %v774_v12  ;;  %898 = vadd.xlane.f32.xlu0 %v2004_v31  ;;  %1598 = vpow2.f32 %v793_v50  ;;  %v1432_v12 = vsel %vm946_vm13, 1.0, %v1760_v60  ;;  %v781_v44 = vsub.f32 %v2008_v35, %v744_v30 }
 0x23c   : > { %v978_v50 = vmul.f32 %v1432_v12, %v2014_v38 }
 0x23d   : > { %v801_v26 = vmul.f32 1.442695, %v787_v20 }
 0x23e   : > { %v764_v48 = vpop.permute.xlu1 %763 }
 0x23f   : > { %v785_v24 = vsub.f32 %v2014_v38, %v764_v48  ;;  %982 = vadd.xlane.f32.xlu0 %v974_v46  ;;  %1600 = vpow2.f32 %v801_v26  ;;  %v1434_v38 = vsel %vm948_vm14, 1.0, %v1760_v60 }
 0x241   : > { %v797_v19 = vmul.f32 1.442695, %v785_v24  ;;  %v980_v24 = vmul.f32 %v1434_v38, %v2004_v31 }
 0x242   : > { %v759_v18 = vpop.permute.xlu1 %758 }
 0x243   : > { %986 = vadd.xlane.f32.xlu0 %v976_v45  ;;  %1602 = vpow2.f32 %v797_v19  ;;  %v784_v49 = vsub.f32 %v2010_v36, %v759_v18  ;;  %v573_v18 = vand.u32 65535, %v2179_v41 }
 0x246   : > { %v779_v21 = vpop.permute.xlu1 %778 }
 0x247   : > { %990 = vadd.xlane.f32.xlu0 %v978_v50  ;;  %v657_v50 = vand.u32 65535, %v2171_v34 }
 0x248   : > { %v1599_v20 = vpop.eup %1598 }
 0x249   : > { %v659_v31 = vcvt.s32.f32 %v657_v50 }
 0x24a   : > { %v749_v13 = vpop.permute.xlu1 %748 }
 0x24b   : > { %v782_v47 = vsub.f32 %v2020_v42, %v749_v13  ;;  %809 = vadd.xlane.f32.xlu0 %v1599_v20  ;;  %v789_v42 = vmul.f32 1.442695, %v781_v44  ;;  %v601_v13 = vand.u32 65535, %v2165_v32 }
 0x24c   : > { %v1601_v46 = vpop.eup %1600 }
 0x24d   : > { %v791_v48 = vmul.f32 1.442695, %v782_v47  ;;  %v603_v12 = vcvt.s32.f32 %v601_v13  ;;  %v795_v47 = vmul.f32 1.442695, %v784_v49 }
 0x24f   : > { %1604 = vpow2.f32 %v791_v48  ;;  %817 = vadd.xlane.f32.xlu0 %v1601_v46  ;;  %v788_v48 = vsub.f32 %v2016_v39, %v779_v21  ;;  %v629_v21 = vand.u32 65535, %v2188_v17  ;;  %v615_v17 = vand.u32 65535, %v2197_v2  ;;  %v883_v2 = vld [vmem:[#allocation4 + $0x28] sm:$0xff] }
 0x250   : > { %v1603_v26 = vpop.eup %1602  ;;  %1606 = vpow2.f32 %v789_v42  ;;  %v879_v42 = vld [vmem:[#allocation4 + $0x8] sm:$0xff] }
 0x251   : > { %1608 = vpow2.f32 %v795_v47  ;;  %v803_v36 = vmul.f32 1.442695, %v788_v48  ;;  %v631_v41 = vcvt.s32.f32 %v629_v21 }
 0x253   : > { %813 = vadd.xlane.f32.xlu0 %v1603_v26  ;;  %v575_v26 = vcvt.s32.f32 %v573_v18  ;;  %1610 = vpow2.f32 %v803_v36 }
 0x25c   : > { %v1605_v19 = vpop.eup %1604 }
 0x25d   : > { %807 = vadd.xlane.f32.xlu0 %v1605_v19  ;;  %v1607_v34 = vpop.eup %1606 }
 0x261   : > { %994 = vadd.xlane.f32.xlu0 %v980_v24  ;;  %v1609_v24 = vpop.eup %1608 }
 0x262   : > { %v1611_v50 = vpop.eup %1610 }
 0x267   : > { %v2280_v45 = vpop.xlane.xlu0 %605 }
 0x268   : > { %vm607_vm15 = vcmp.eq.f32.partialorder %v2175_v37, %v2280_v45 }
 0x269   : > { %v608_v20 = vsel %vm607_vm15, %v603_v12, inf }
 0x26a   : > { %609 = vmin.xlane.f32.xlu1 %v608_v20  ;;  %v671_v20 = vand.u32 65535, %v2206_v22  ;;  %v587_v22 = vand.u32 65535, %v2215_v58  ;;  %v969_v58 = vld [vmem:[#allocation5 + $0x18] sm:$0xff] }
 0x26b   : > { %v2286_v35 = vpop.xlane.xlu0 %661 }
 0x26c   : > { %vm663_vm0 = vcmp.eq.f32.partialorder %v2184_v23, %v2286_v35  ;;  %v769_v23 = vpop.permute.xlu1 %768  ;;  %v673_v18 = vcvt.s32.f32 %v671_v20 }
 0x26d   : > { %v664_v32 = vsel %vm663_vm0, %v659_v31, inf  ;;  %v786_v19 = vsub.f32 %v2022_v43, %v769_v23  ;;  %v617_v43 = vcvt.s32.f32 %v615_v17 }
 0x26e   : > { %665 = vmin.xlane.f32.xlu1 %v664_v32 }
 0x26f   : > { %v2291_v46 = vpop.xlane.xlu0 %577 }
 0x270   : > { %vm579_vm1 = vcmp.eq.f32.partialorder %v2193_v33, %v2291_v46  ;;  %v799_v33 = vmul.f32 1.442695, %v786_v19  ;;  %v967_v19 = vld [vmem:[#allocation5 + $0x8] sm:$0xff] }
 0x271   : > { %v580_v30 = vsel %vm579_vm1, %v575_v26, inf  ;;  %v885_v26 = vld [vmem:[#allocation4 + $0x38] sm:$0xff] }
 0x272   : > { %805 = vadd.xlane.f32.xlu1 %v1607_v34  ;;  %1612 = vpow2.f32 %v799_v33  ;;  %v643_v33 = vand.u32 65535, %v2224_v27  ;;  %v971_v27 = vld [vmem:[#allocation5 + $0x28] sm:$0xff] }
 0x273   : > { %v2296_v37 = vpop.xlane.xlu0 %633 }
 0x274   : > { %vm635_vm9 = vcmp.eq.f32.partialorder %v2202_v40, %v2296_v37  ;;  %v881_v40 = vld [vmem:[#allocation4 + $0x18] sm:$0xff] }
 0x275   : > { %v636_v44 = vsel %vm635_vm9, %v631_v41, inf }
 0x276   : > { %581 = vmin.xlane.f32.xlu1 %v580_v30 }
 0x277   : > { %v2302_v38 = vpop.xlane.xlu0 %619 }
 0x278   : > { %vm621_vm10 = vcmp.eq.f32.partialorder %v2211_v28, %v2302_v38 }
 0x279   : > { %v622_v32 = vsel %vm621_vm10, %v617_v43, inf }
 0x27a   : > { %637 = vmin.xlane.f32.xlu1 %v636_v44  ;;  %v589_v44 = vcvt.s32.f32 %v587_v22  ;;  %v2698_v22 = vsub.f32 %v2040_v51, %v2050_v55  ;;  %v704_v51 = vld [vmem:[#allocation3 + $0x18] sm:$0xff] }
 0x27b   : > { %v2304_v13 = vpop.xlane.xlu0 %675 }
 0x27c   : > { %vm677_vm11 = vcmp.eq.f32.partialorder %v2220_v10, %v2304_v13 }
 0x27d   : > { %v678_v34 = vsel %vm677_vm11, %v673_v18, inf  ;;  %v882_v18 = vld [vmem:[#allocation4 + $0x20] sm:$0xff] }
 0x27e   : > { %811 = vadd.xlane.f32.xlu1 %v1609_v24 }
 0x27f   : > { %v2311_v47 = vpop.xlane.xlu0 %591  ;;  %v1613_v30 = vpop.eup %1612 }
 0x280   : > { %v889_v12 = vpop.xlane.xlu1 %888  ;;  %vm593_vm12 = vcmp.eq.f32.partialorder %v2227_v4, %v2311_v47 }
 0x281   : > { %v903_v49 = vadd.f32 %v889_v12, %v879_v42  ;;  %v594_v17 = vsel %vm593_vm12, %v589_v44, inf  ;;  %v645_v12 = vcvt.s32.f32 %v643_v33 }
 0x282   : > { %819 = vadd.xlane.f32.xlu1 %v1611_v50 }
 0x283   : > { %911 = vst.msk [vmem:[#allocation4 + $0x8] sm:$0xff] %vm829_vm2, %v903_v49  ;;  %v2316_v21 = vpop.xlane.xlu0 %647 }
 0x284   : > { %v893_v31 = vpop.xlane.xlu1 %892  ;;  %vm649_vm14 = vcmp.eq.f32.partialorder %v2232_v25, %v2316_v21  ;;  %v878_v25 = vld [vmem:[#allocation4] sm:$0xff] }
 0x285   : > { %v905_v48 = vadd.f32 %v893_v31, %v881_v40  ;;  %v650_v40 = vsel %vm649_vm14, %v645_v12, inf }
 0x286   : > { %623 = vmin.xlane.f32.xlu1 %v622_v32  ;;  %v880_v32 = vld [vmem:[#allocation4 + $0x10] sm:$0xff] }
 0x287   : > { %913 = vst.msk [vmem:[#allocation4 + $0x18] sm:$0xff] %vm829_vm2, %v905_v48 }
 0x288   : > { %v897_v36 = vpop.xlane.xlu1 %896 }
 0x289   : > { %v907_v28 = vadd.f32 %v897_v36, %v883_v2  ;;  %v2697_v36 = vsub.f32 %v2042_v52, %v2056_v56  ;;  %v2699_v56 = vsub.f32 %v2095_v3, %v2115_v8  ;;  %v2700_v8 = vsub.f32 %v2125_v11, %v2142_v16 }
 0x28a   : > { %679 = vmin.xlane.f32.xlu1 %v678_v34 }
 0x28b   : > { %915 = vst.msk [vmem:[#allocation4 + $0x28] sm:$0xff] %vm829_vm2, %v907_v28  ;;  %v941_v10 = vpop.permute.xlu0 %940  ;;  %v721_v28 = vmul.f32 1.442695, %v2697_v36 }
 0x28c   : > { %v901_v23 = vpop.xlane.xlu1 %900  ;;  %vm949_vm13 = vcmp.eq.s32.totalorder %v2161_v29, %v941_v10  ;;  %v725_v10 = vmul.f32 1.442695, %v2699_v56  ;;  %v612_v56 = vcvt.f32.s32 %v2280_v45 }
 0x28d   : > { %v909_v41 = vadd.f32 %v901_v23, %v885_v26  ;;  %v1435_v50 = vsel %vm949_vm13, 1.0, %v1760_v60  ;;  %v884_v26 = vld [vmem:[#allocation4 + $0x30] sm:$0xff]  ;;  %v729_v23 = vmul.f32 1.442695, %v2698_v22  ;;  %1614 = vpow2.f32 %v721_v28  ;;  %v702_v28 = vld [vmem:[#allocation3 + $0x8] sm:$0xff] }
 0x28e   : > { %815 = vadd.xlane.f32.xlu1 %v1613_v30  ;;  %v981_v29 = vmul.f32 %v1435_v50, %v2016_v39  ;;  %v719_v50 = vmul.f32 1.442695, %v2700_v8 }
 0x28f   : > { %917 = vst.msk [vmem:[#allocation4 + $0x38] sm:$0xff] %vm829_vm2, %v909_v41  ;;  %1616 = vpow2.f32 %v729_v23 }
 0x290   : > { %v985_v24 = vpop.xlane.xlu1 %984  ;;  %1618 = vpow2.f32 %v725_v10  ;;  %v2702_v10 = vsub.f32 %v2060_v57, %v2079_v63 }
 0x291   : > { %v999_v42 = vadd.f32 %v985_v24, %v967_v19  ;;  %v966_v19 = vld [vmem:[#allocation5] sm:$0xff]  ;;  %v968_v24 = vld [vmem:[#allocation5 + $0x10] sm:$0xff]  ;;  %1620 = vpow2.f32 %v719_v50 }
 0x292   : > { %595 = vmin.xlane.f32.xlu1 %v594_v17  ;;  %v970_v17 = vld [vmem:[#allocation5 + $0x20] sm:$0xff] }
 0x293   : > { %1007 = vst.msk [vmem:[#allocation5 + $0x8] sm:$0xff] %vm829_vm2, %v999_v42  ;;  %v701_v50 = vld [vmem:[#allocation3] sm:$0xff] }
 0x294   : > { %v989_v4 = vpop.xlane.xlu1 %988 }
 0x295   : > { %v1001_v49 = vadd.f32 %v989_v4, %v969_v58  ;;  %v703_v4 = vld [vmem:[#allocation3 + $0x10] sm:$0xff] }
 0x296   : > { %651 = vmin.xlane.f32.xlu1 %v650_v40 }
 0x297   : > { %1009 = vst.msk [vmem:[#allocation5 + $0x18] sm:$0xff] %vm829_vm2, %v1001_v49 }
 0x298   : > { %v993_v43 = vpop.xlane.xlu1 %992 }
 0x299   : > { %v1003_v20 = vadd.f32 %v993_v43, %v971_v27 }
 0x29a   : > { %996 = vadd.xlane.f32.xlu1 %v981_v29  ;;  %v1615_v58 = vpop.eup %1614  ;;  %v707_v29 = vld [vmem:[#allocation3 + $0x30] sm:$0xff] }
 0x29b   : > { %1011 = vst.msk [vmem:[#allocation5 + $0x28] sm:$0xff] %vm829_vm2, %v1003_v20  ;;  %v735_v40 = vmul.f32 %v1615_v58, %v703_v4 }
 0x29c   : > { %v1617_v27 = vpop.eup %1616 }
 0x2b8   : > { %v887_v31 = vpop.xlane.xlu0 %886 }
 0x2b9   : > { %v902_v48 = vadd.f32 %v887_v31, %v878_v25  ;;  %v739_v25 = vmul.f32 %v1617_v27, %v707_v29  ;;  %v1619_v31 = vpop.eup %1618 }
 0x2ba   : > { %v1621_v36 = vpop.eup %1620 }
 0x2bb   : > { %910 = vst.msk [vmem:[#allocation4] sm:$0xff] %vm829_vm2, %v902_v48 }
 0x2bc   : > { %v891_v60 = vpop.xlane.xlu0 %890 }
 0x2bd   : > { %v904_v2 = vadd.f32 %v891_v60, %v880_v32  ;;  %v705_v32 = vld [vmem:[#allocation3 + $0x20] sm:$0xff] }
 0x2be   : > { %v737_v16 = vmul.f32 %v1619_v31, %v705_v32  ;;  %v2704_v32 = vsub.f32 %v2119_v9, %v2138_v15  ;;  %v708_v15 = vld [vmem:[#allocation3 + $0x38] sm:$0xff] }
 0x2bf   : > { %912 = vst.msk [vmem:[#allocation4 + $0x10] sm:$0xff] %vm829_vm2, %v904_v2 }
 0x2c0   : > { %v895_v39 = vpop.xlane.xlu0 %894 }
 0x2c1   : > { %v906_v34 = vadd.f32 %v895_v39, %v882_v18  ;;  %v734_v39 = vmul.f32 %v1621_v36, %v702_v28  ;;  %v850_v28 = vld [vmem:[#allocation6 + $0x20] sm:$0xff] }
 0x2c3   : > { %914 = vst.msk [vmem:[#allocation4 + $0x20] sm:$0xff] %vm829_vm2, %v906_v34  ;;  %v2701_v34 = vsub.f32 %v2066_v59, %v2085_v0  ;;  %v668_v0 = vcvt.f32.s32 %v2286_v35  ;;  %v852_v35 = vld [vmem:[#allocation6 + $0x30] sm:$0xff] }
 0x2c4   : > { %v899_v30 = vpop.xlane.xlu0 %898 }
 0x2c5   : > { %v908_v41 = vadd.f32 %v899_v30, %v884_v26  ;;  %v717_v26 = vmul.f32 1.442695, %v2701_v34  ;;  %v972_v30 = vld [vmem:[#allocation5 + $0x30] sm:$0xff]  ;;  %v669_v45 = vshll.u32 %v668_v0, 16  ;;  %v706_v0 = vld [vmem:[#allocation3 + $0x28] sm:$0xff] }
 0x2c7   : > { %916 = vst.msk [vmem:[#allocation4 + $0x30] sm:$0xff] %vm829_vm2, %v908_v41  ;;  %1622 = vpow2.f32 %v717_v26 }
 0x2c8   : > { %v983_v44 = vpop.xlane.xlu0 %982 }
 0x2c9   : > { %v998_v33 = vadd.f32 %v983_v44, %v966_v19  ;;  %v723_v44 = vmul.f32 1.442695, %v2702_v10  ;;  %v682_v10 = vcvt.f32.s32 %v2304_v13  ;;  %v598_v13 = vcvt.f32.s32 %v2311_v47 }
 0x2cb   : > { %1006 = vst.msk [vmem:[#allocation5] sm:$0xff] %vm829_vm2, %v998_v33  ;;  %1624 = vpow2.f32 %v723_v44  ;;  %v599_v61 = vshll.u32 %v598_v13, 16 }
 0x2cc   : > { %v987_v55 = vpop.xlane.xlu0 %986 }
 0x2cd   : > { %v1000_v42 = vadd.f32 %v987_v55, %v968_v24  ;;  %v613_v24 = vshll.u32 %v612_v56, 16 }
 0x2cf   : > { %1008 = vst.msk [vmem:[#allocation5 + $0x10] sm:$0xff] %vm829_vm2, %v1000_v42  ;;  %v848_v42 = vld [vmem:[#allocation6 + $0x10] sm:$0xff] }
 0x2d0   : > { %v991_v12 = vpop.xlane.xlu0 %990 }
 0x2d1   : > { %v1002_v49 = vadd.f32 %v991_v12, %v970_v17  ;;  %v2703_v17 = vsub.f32 %v2089_v1, %v2109_v7  ;;  %v584_v7 = vcvt.f32.s32 %v2291_v46 }
 0x2d3   : > { %1010 = vst.msk [vmem:[#allocation5 + $0x20] sm:$0xff] %vm829_vm2, %v1002_v49  ;;  %v731_v58 = vmul.f32 1.442695, %v2703_v17  ;;  %v585_v54 = vshll.u32 %v584_v7, 16 }
 0x2d4   : > { %v810_v43 = vpop.xlane.xlu0 %809  ;;  %v1623_v4 = vpop.eup %1622 }
 0x2d5   : > { %v823_v20 = vadd.f32 %v810_v43, %v735_v40  ;;  %1626 = vpow2.f32 %v731_v58  ;;  %v733_v27 = vmul.f32 %v1623_v4, %v701_v50 }
 0x2d7   : > { %832 = vst.msk [vmem:[#allocation3 + $0x10] sm:$0xff] %vm829_vm2, %v823_v20 }
 0x2d8   : > { %v818_v48 = vpop.xlane.xlu0 %817 }
 0x2d9   : > { %v827_v60 = vadd.f32 %v818_v48, %v739_v25  ;;  %v640_v25 = vcvt.f32.s32 %v2296_v37  ;;  %v846_v48 = vld [vmem:[#allocation6] sm:$0xff] }
 0x2db   : > { %836 = vst.msk [vmem:[#allocation3 + $0x30] sm:$0xff] %vm829_vm2, %v827_v60  ;;  %v727_v60 = vmul.f32 1.442695, %v2704_v32  ;;  %v641_v53 = vshll.u32 %v640_v25, 16 }
 0x2dc   : > { %v814_v2 = vpop.xlane.xlu0 %813 }
 0x2dd   : > { %v825_v18 = vadd.f32 %v814_v2, %v737_v16  ;;  %v1625_v16 = vpop.eup %1624  ;;  %1628 = vpow2.f32 %v727_v60 }
 0x2df   : > { %834 = vst.msk [vmem:[#allocation3 + $0x20] sm:$0xff] %vm829_vm2, %v825_v18 }
 0x2e2   : > { %v1627_v34 = vpop.eup %1626 }
 0x2e3   : > { %v740_v59 = vmul.f32 %v1627_v34, %v708_v15 }
 0x2e6   : > { %v808_v22 = vpop.xlane.xlu0 %807 }
 0x2e7   : > { %v822_v23 = vadd.f32 %v808_v22, %v734_v39  ;;  %v736_v39 = vmul.f32 %v1625_v16, %v704_v51 }
 0x2e9   : > { %831 = vst.msk [vmem:[#allocation3 + $0x8] sm:$0xff] %vm829_vm2, %v822_v23 }
 0x2ea   : > { %v995_v41 = vpop.xlane.xlu0 %994  ;;  %v1629_v6 = vpop.eup %1628 }
 0x2eb   : > { %v1004_v19 = vadd.f32 %v995_v41, %v972_v30  ;;  %v626_v30 = vcvt.f32.s32 %v2302_v38  ;;  %v853_v38 = vld [vmem:[#allocation6 + $0x38] sm:$0xff] }
 0x2ed   : > { %1012 = vst.msk [vmem:[#allocation5 + $0x30] sm:$0xff] %vm829_vm2, %v1004_v19  ;;  %v627_v56 = vshll.u32 %v626_v30, 16 }
 0x2f3   : > { %v610_v33 = vpop.xlane.xlu1 %609 }
 0x2f4   : > { %v611_v55 = vcvt.f32.s32 %v610_v33  ;;  %v849_v33 = vld [vmem:[#allocation6 + $0x18] sm:$0xff] }
 0x2f6   : > { %v614_v12 = vadd.s32 %v613_v24, %v611_v55  ;;  %v683_v55 = vshll.u32 %v682_v10, 16 }
 0x2f7   : > { %v666_v8 = vpop.xlane.xlu1 %665 }
 0x2f8   : > { %v856_v63 = vsel %vm840_vm4, %v614_v12, %v848_v42  ;;  %v667_v49 = vcvt.f32.s32 %v666_v8  ;;  %v738_v12 = vmul.f32 %v1629_v6, %v706_v0 }
 0x2f9   : > { %864 = vst.msk [vmem:[#allocation6 + $0x10] sm:$0xff] %vm829_vm2, %v856_v63 }
 0x2fa   : > { %v670_v40 = vadd.s32 %v669_v45, %v667_v49  ;;  %v654_v45 = vcvt.f32.s32 %v2316_v21  ;;  %v847_v49 = vld [vmem:[#allocation6 + $0x8] sm:$0xff] }
 0x2fb   : > { %v806_v43 = vpop.xlane.xlu1 %805 }
 0x2fc   : > { %v860_v29 = vsel %vm844_vm3, %v670_v40, %v852_v35  ;;  %v821_v20 = vadd.f32 %v806_v43, %v733_v27  ;;  %vm839_vm3 = vcmp.gt.f32.partialorder %v2134_v14, %v2125_v11  ;;  %v655_v40 = vshll.u32 %v654_v45, 16  ;;  %v973_v43 = vld [vmem:[#allocation5 + $0x38] sm:$0xff] }
 0x2fd   : > { %868 = vst.msk [vmem:[#allocation6 + $0x30] sm:$0xff] %vm829_vm2, %v860_v29  ;;  %v2705_v29 = vld [vmem:[#allocation23_spill] sm:$0xff] }
 0x2fe   : > { %830 = vst.msk [vmem:[#allocation3] sm:$0xff] %vm829_vm2, %v821_v20  ;;  %vm843_vm4 = vcmp.gt.f32.partialorder %v2705_v29, %v2119_v9 }
 0x2ff   : > { %v582_v52 = vpop.xlane.xlu1 %581 }
 0x300   : > { %v583_v31 = vcvt.f32.s32 %v582_v52 }
 0x302   : > { %v586_v46 = vadd.s32 %v585_v54, %v583_v31 }
 0x303   : > { %v638_v2 = vpop.xlane.xlu1 %637 }
 0x304   : > { %v854_v18 = vsel %vm838_vm6, %v586_v46, %v846_v48  ;;  %v639_v36 = vcvt.f32.s32 %v638_v2 }
 0x305   : > { %862 = vst.msk [vmem:[#allocation6] sm:$0xff] %vm829_vm2, %v854_v18 }
 0x306   : > { %v642_v37 = vadd.s32 %v641_v53, %v639_v36 }
 0x307   : > { %v812_v26 = vpop.xlane.xlu1 %811 }
 0x308   : > { %v858_v22 = vsel %vm842_vm8, %v642_v37, %v850_v28  ;;  %v824_v23 = vadd.f32 %v812_v26, %v736_v39 }
 0x309   : > { %866 = vst.msk [vmem:[#allocation6 + $0x20] sm:$0xff] %vm829_vm2, %v858_v22 }
 0x30a   : > { %833 = vst.msk [vmem:[#allocation3 + $0x18] sm:$0xff] %vm829_vm2, %v824_v23 }
 0x30b   : > { %v820_v62 = vpop.xlane.xlu1 %819 }
 0x30c   : > { %v828_v41 = vadd.f32 %v820_v62, %v740_v59 }
 0x30e   : > { %837 = vst.msk [vmem:[#allocation3 + $0x38] sm:$0xff] %vm829_vm2, %v828_v41 }
 0x30f   : > { %v624_v19 = vpop.xlane.xlu1 %623 }
 0x310   : > { %v625_v44 = vcvt.f32.s32 %v624_v19 }
 0x312   : > { %v628_v3 = vadd.s32 %v627_v56, %v625_v44 }
 0x313   : > { %v680_v24 = vpop.xlane.xlu1 %679 }
 0x314   : > { %v857_v42 = vsel %vm841_vm5, %v628_v3, %v849_v33  ;;  %v681_v17 = vcvt.f32.s32 %v680_v24 }
 0x315   : > { %865 = vst.msk [vmem:[#allocation6 + $0x18] sm:$0xff] %vm829_vm2, %v857_v42 }
 0x316   : > { %v684_v58 = vadd.s32 %v683_v55, %v681_v17 }
 0x317   : > { %v816_v4 = vpop.xlane.xlu1 %815 }
 0x318   : > { %v861_v8 = vsel %vm845_vm7, %v684_v58, %v853_v38  ;;  %v826_v50 = vadd.f32 %v816_v4, %v738_v12 }
 0x319   : > { %869 = vst.msk [vmem:[#allocation6 + $0x38] sm:$0xff] %vm829_vm2, %v861_v8 }
 0x31a   : > { %835 = vst.msk [vmem:[#allocation3 + $0x28] sm:$0xff] %vm829_vm2, %v826_v50 }
 0x31b   : > { %v596_v57 = vpop.xlane.xlu1 %595 }
 0x31c   : > { %v597_v63 = vcvt.f32.s32 %v596_v57 }
 0x31e   : > { %v600_v35 = vadd.s32 %v599_v61, %v597_v63 }
 0x31f   : > { %v652_v47 = vpop.xlane.xlu1 %651 }
 0x320   : > { %v855_v27 = vsel %vm839_vm3, %v600_v35, %v847_v49  ;;  %v653_v1 = vcvt.f32.s32 %v652_v47 }
 0x321   : > { %863 = vst.msk [vmem:[#allocation6 + $0x8] sm:$0xff] %vm829_vm2, %v855_v27 }
 0x322   : > { %v656_v7 = vadd.s32 %v655_v40, %v653_v1  ;;  %1017 = sbr.rel (%p1436_p6) target bundleno = 1069 (0x42d), region = 85 }
 0x323   : > { %v997_v20 = vpop.xlane.xlu1 %996 }
 0x324   : > { %v859_v21 = vsel %vm843_vm4, %v656_v7, %v851_v5  ;;  %v1005_v52 = vadd.f32 %v997_v20, %v973_v43 }
 0x325   : > { %867 = vst.msk [vmem:[#allocation6 + $0x28] sm:$0xff] %vm829_vm2, %v859_v21 }
 0x326   : > { %1013 = vst.msk [vmem:[#allocation5 + $0x38] sm:$0xff] %vm829_vm2, %v1005_v52 }
 0x327   : > { %v2706_v11 = vld [vmem:[#allocation16_spill] sm:$0xff]  ;;  %v2707_v14 = vld [vmem:[#allocation17_spill] sm:$0xff]  ;;  %v2708_v54 = vld [vmem:[#allocation18_spill] sm:$0xff]  ;;  %v1761_v9 = vmov 0.0  }
 0x328   : > { %vm1123_vm5 = vcmp.ne.s32.totalorder %v2706_v11, 1  ;;  %vm1124_vm6 = vcmp.ne.s32.totalorder %v2707_v14, 1  ;;  %vm1125_vm7 = vcmp.ne.s32.totalorder %v2708_v54, 1  ;;  %v2709_v25 = vld [vmem:[#allocation19_spill] sm:$0xff]  ;;  %v2710_v31 = vld [vmem:[#allocation20_spill] sm:$0xff]  ;;  %v1026_v16 = vld [vmem:[#allocation3] sm:$0xff] }
 0x329   : > { %vm1126_vm8 = vcmp.ne.s32.totalorder %v2709_v25, 1  ;;  %vm1127_vm15 = vcmp.ne.s32.totalorder %v2710_v31, 1  ;;  %v2420_v48 = vsel %vm1123_vm5, 1.0, %v1761_v9  ;;  %v2425_v32 = vsel %vm1124_vm6, 1.0, %v1761_v9  ;;  %v2711_v2 = vld [vmem:[#allocation21_spill] sm:$0xff]  ;;  %v1027_v36 = vld [vmem:[#allocation3 + $0x8] sm:$0xff] }
 0x32a   : > { %v2430_v60 = vsel %vm1125_vm7, 1.0, %v1761_v9  ;;  %v2435_v46 = vsel %vm1126_vm8, 1.0, %v1761_v9  ;;  %vm1128_vm0 = vcmp.ne.s32.totalorder %v2711_v2, 1  ;;  %v1243_v51 = vsel %vm829_vm2, %v2420_v48, 0.0  ;;  %v1028_v39 = vld [vmem:[#allocation3 + $0x10] sm:$0xff]  ;;  %v2712_v34 = vld [vmem:[#allocation22_spill] sm:$0xff] }
 0x32b   : > { %v1244_v53 = vsel %vm829_vm2, %v2425_v32, 0.0  ;;  %v1246_v18 = vsel %vm829_vm2, %v2430_v60, 0.0  ;;  %v2447_v28 = vsel %vm1127_vm15, 1.0, %v1761_v9  ;;  %vm1129_vm1 = vcmp.ne.s32.totalorder %v2712_v34, 1  ;;  %v1029_v15 = vld [vmem:[#allocation3 + $0x18] sm:$0xff]  ;;  %v1030_v59 = vld [vmem:[#allocation3 + $0x20] sm:$0xff] }
 0x32c   : > { %v1245_v37 = vadd.f32 %v1244_v53, %v1243_v51  ;;  %v1248_v26 = vsel %vm829_vm2, %v2435_v46, 0.0  ;;  %1630 = vlog2.f32 %v1026_v16  ;;  %v2455_v22 = vsel %vm1128_vm0, 1.0, %v1761_v9  ;;  %v2713_v62 = vld [vmem:[#allocation25_spill] sm:$0xff]  ;;  %v1031_v41 = vld [vmem:[#allocation3 + $0x28] sm:$0xff]  ;;  %v1032_v10 = vld [vmem:[#allocation3 + $0x30] sm:$0xff] }
 0x32d   : > { %1632 = vlog2.f32 %v1027_v36  ;;  %vm1130_vm9 = vcmp.ne.s32.totalorder %v2713_v62, 1  ;;  %v1250_v30 = vsel %vm829_vm2, %v2447_v28, 0.0  ;;  %v2463_v19 = vsel %vm1129_vm1, 1.0, %v1761_v9  ;;  %v1033_v33 = vld [vmem:[#allocation3 + $0x38] sm:$0xff]  ;;  %v1179_v24 = vld [vmem:[#allocation6] sm:$0xff]  ;;  %v1180_v0 = vld [vmem:[#allocation6 + $0x8] sm:$0xff] }
 0x32e   : > { %v1247_v23 = vadd.f32 %v1246_v18, %v1245_v37  ;;  %1634 = vlog2.f32 %v1028_v39  ;;  %v1252_v44 = vsel %vm829_vm2, %v2455_v22, 0.0  ;;  %v2470_v3 = vsel %vm1130_vm9, 1.0, %v1761_v9  ;;  %v1181_v42 = vld [vmem:[#allocation6 + $0x10] sm:$0xff]  ;;  %v1182_v38 = vld [vmem:[#allocation6 + $0x18] sm:$0xff]  ;;  %v1183_v4 = vld [vmem:[#allocation6 + $0x20] sm:$0xff] }
 0x32f   : > { %1636 = vlog2.f32 %v1029_v15  ;;  %v1254_v55 = vsel %vm829_vm2, %v2463_v19, 0.0  ;;  %vm1187_vm10 = vcmp.eq.s32.totalorder %v1179_v24, %v2706_v11  ;;  %vm1188_vm11 = vcmp.eq.s32.totalorder %v1180_v0, %v2707_v14  ;;  %v1074_v13 = vld [vmem:[#allocation4] sm:$0xff]  ;;  %v1075_v8 = vld [vmem:[#allocation4 + $0x8] sm:$0xff]  ;;  %v1076_v50 = vld [vmem:[#allocation4 + $0x10] sm:$0xff] }
 0x330   : > { %v1249_v56 = vadd.f32 %v1248_v26, %v1247_v23  ;;  %1638 = vlog2.f32 %v1030_v59  ;;  %v1256_v58 = vsel %vm829_vm2, %v2470_v3, 0.0  ;;  %vm1195_vm12 = vmand %vm1187_vm10, %vm1123_vm5  ;;  %vm1189_vm13 = vcmp.eq.s32.totalorder %v1181_v42, %v2708_v54  ;;  %v1018_v61 = vld [vmem:[#allocation2] sm:$0xff]  ;;  %v1077_v45 = vld [vmem:[#allocation4 + $0x18] sm:$0xff] }
 0x331   : > { %1640 = vlog2.f32 %v1031_v41  ;;  %vm1196_vm14 = vmand %vm1188_vm11, %vm1124_vm6  ;;  %vm1190_vm3 = vcmp.eq.s32.totalorder %v1182_v38, %v2709_v25  ;;  %v1445_v63 = vsel %vm1195_vm12, 1.0, %v1761_v9  ;;  %v1019_v35 = vld [vmem:[#allocation2 + $0x8] sm:$0xff]  ;;  %v1078_v47 = vld [vmem:[#allocation4 + $0x20] sm:$0xff]  ;;  %vm1191_vm4 = vcmp.eq.s32.totalorder %v1183_v4, %v2710_v31 }
 0x332   : > { %v1251_v6 = vadd.f32 %v1250_v30, %v1249_v56  ;;  %1642 = vlog2.f32 %v1032_v10  ;;  %v1446_v49 = vsel %vm1196_vm14, 1.0, %v1761_v9  ;;  %v1079_v40 = vld [vmem:[#allocation4 + $0x28] sm:$0xff]  ;;  %vm2491_vm5 = vmand %vm1189_vm13, %vm1125_vm7  ;;  %v1020_v5 = vld [vmem:[#allocation2 + $0x10] sm:$0xff]  ;;  %v2495_v7 = vmul.f32 0.00390625, %v1074_v13 }
 0x333   : > { %1644 = vlog2.f32 %v1033_v33  ;;  %v1080_v43 = vld [vmem:[#allocation4 + $0x30] sm:$0xff]  ;;  %v2497_v29 = vmul.f32 0.00390625, %v1075_v8  ;;  %v2499_v20 = vmul.f32 0.00390625, %v1076_v50  ;;  %vm2505_vm6 = vmand %vm1190_vm3, %vm1126_vm8  ;;  %v1081_v14 = vld [vmem:[#allocation4 + $0x38] sm:$0xff]  ;;  %v2509_v54 = vmul.f32 0.00390625, %v1077_v45 }
 0x334   : > { %v1253_v17 = vadd.f32 %v1252_v44, %v1251_v6  ;;  %v1219_v16 = vsel %vm829_vm2, %v1445_v63, 0.0  ;;  %v1220_v51 = vsel %vm829_vm2, %v1446_v49, 0.0  ;;  %v1021_v18 = vld [vmem:[#allocation2 + $0x18] sm:$0xff]  ;;  %v2513_v37 = vmul.f32 0.00390625, %v1078_v47  ;;  %vm2521_vm7 = vmand %vm1191_vm4, %vm1127_vm15  ;;  %v1022_v23 = vld [vmem:[#allocation2 + $0x20] sm:$0xff] }
 0x335   : > { %v2515_v39 = vmul.f32 0.00390625, %v1079_v40  ;;  %v1447_v26 = vsel %vm2491_vm5, 1.0, %v1761_v9  ;;  %v1058_v41 = vld [vmem:[#allocation5] sm:$0xff]  ;;  %v2528_v56 = vmul.f32 0.00390625, %v1080_v43  ;;  %v1448_v10 = vsel %vm2505_vm6, 1.0, %v1761_v9  ;;  %v1023_v44 = vld [vmem:[#allocation2 + $0x28] sm:$0xff] }
 0x336   : > { %v1255_v12 = vadd.f32 %v1254_v55, %v1253_v17  ;;  %v1059_v24 = vld [vmem:[#allocation5 + $0x8] sm:$0xff]  ;;  %v2533_v0 = vmul.f32 0.00390625, %v1081_v14  ;;  %v1221_v42 = vadd.f32 %v1220_v51, %v1219_v16  ;;  %v1061_v4 = vld [vmem:[#allocation5 + $0x18] sm:$0xff]  ;;  %v2540_v13 = vsel %vm2521_vm7, 1.0, %v1761_v9  ;;  %v1062_v63 = vld [vmem:[#allocation5 + $0x20] sm:$0xff] }
 0x337   : > { %v2535_v55 = vld [vmem:[#allocation6 + $0x28] sm:$0xff]  ;;  %v1222_v8 = vsel %vm829_vm2, %v1447_v26, 0.0  ;;  %v1025_v40 = vld [vmem:[#allocation2 + $0x38] sm:$0xff]  ;;  %v1064_v14 = vld [vmem:[#allocation5 + $0x30] sm:$0xff] }
 0x338   : > { %v1257_v57 = vadd.f32 %v1256_v58, %v1255_v12  ;;  %v1060_v12 = vld [vmem:[#allocation5 + $0x10] sm:$0xff]  ;;  %vm1192_vm8 = vcmp.eq.s32.totalorder %v2535_v55, %v2711_v2 }
 0x339   : > { %v1631_v1 = vpop.eup %1630  ;;  %vm1200_vm15 = vmand %vm1192_vm8, %vm1128_vm0 }
 0x33a   : > { %1258 = vadd.xlane.f32.xlu1 %v1257_v57  ;;  %v1633_v52 = vpop.eup %1632  ;;  %v1035_v11 = vmul.f32 0.6931472, %v1631_v1  ;;  %v1024_v57 = vld [vmem:[#allocation2 + $0x30] sm:$0xff]  ;;  %v1450_v2 = vsel %vm1200_vm15, 1.0, %v1761_v9 }
 0x33b   : > { %v1635_v53 = vpop.eup %1634  ;;  %v1037_v36 = vmul.f32 0.6931472, %v1633_v52 }
 0x33c   : > { %v1637_v15 = vpop.eup %1636  ;;  %v1039_v59 = vmul.f32 0.6931472, %v1635_v53  ;;  %v1050_v30 = vadd.f32 %v1035_v11, %v1018_v61 }
 0x33d   : > { %v1639_v31 = vpop.eup %1638  ;;  %v1041_v33 = vmul.f32 0.6931472, %v1637_v15  ;;  %v1051_v6 = vadd.f32 %v1037_v36, %v1019_v35  ;;  %v1224_v35 = vsel %vm829_vm2, %v1448_v10, 0.0 }
 0x33e   : > { %v1641_v17 = vpop.eup %1640  ;;  %v1043_v38 = vmul.f32 0.6931472, %v1639_v31  ;;  %v1052_v58 = vadd.f32 %v1039_v59, %v1020_v5  ;;  %v1066_v49 = vsub.f32 %v1050_v30, %v1058_v41  ;;  %v1063_v5 = vld [vmem:[#allocation5 + $0x28] sm:$0xff]  ;;  %v1091_v21 = vsub.f32 %v1050_v30, %v2495_v7 }
 0x33f   : > { %v1643_v50 = vpop.eup %1642  ;;  %v1045_v61 = vmul.f32 0.6931472, %v1641_v17  ;;  %v1053_v45 = vadd.f32 %v1041_v33, %v1021_v18  ;;  %v1067_v43 = vsub.f32 %v1051_v6, %v1059_v24  ;;  %v1065_v18 = vld [vmem:[#allocation5 + $0x38] sm:$0xff]  ;;  %v1092_v25 = vsub.f32 %v1051_v6, %v2497_v29 }
 0x340   : > { %v1645_v47 = vpop.eup %1644  ;;  %v1047_v27 = vmul.f32 0.6931472, %v1643_v50  ;;  %v1054_v1 = vadd.f32 %v1043_v38, %v1022_v23  ;;  %v1068_v16 = vsub.f32 %v1052_v58, %v1060_v12  ;;  %v1093_v26 = vsub.f32 %v1052_v58, %v2499_v20 }
 0x341   : > { %v1049_v52 = vmul.f32 0.6931472, %v1645_v47  ;;  %v1055_v11 = vadd.f32 %v1045_v61, %v1023_v44  ;;  %v1069_v51 = vsub.f32 %v1053_v45, %v1061_v4  ;;  %v1094_v59 = vsub.f32 %v1053_v45, %v2509_v54 }
 0x342   : > { %v1056_v53 = vadd.f32 %v1047_v27, %v1024_v57  ;;  %v1070_v36 = vsub.f32 %v1054_v1, %v1062_v63  ;;  %v1095_v7 = vsub.f32 %v1054_v1, %v2513_v37  ;;  %v1099_v10 = vmul.f32 0.9, %v1066_v49 }
 0x343   : > { %v1057_v15 = vadd.f32 %v1049_v52, %v1025_v40  ;;  %v1071_v23 = vsub.f32 %v1055_v11, %v1063_v5  ;;  %v1096_v41 = vsub.f32 %v1055_v11, %v2515_v39  ;;  %v1100_v31 = vmul.f32 0.9, %v1067_v43  ;;  %v1186_v11 = vld [vmem:[#allocation6 + $0x38] sm:$0xff] }
 0x344   : > { %v1072_v30 = vsub.f32 %v1056_v53, %v1064_v14  ;;  %v1097_v33 = vsub.f32 %v1056_v53, %v2528_v56  ;;  %v1101_v24 = vmul.f32 0.9, %v1068_v16  ;;  %v1102_v17 = vmul.f32 0.9, %v1069_v51  ;;  %v1185_v56 = vld [vmem:[#allocation6 + $0x30] sm:$0xff] }
 0x345   : > { %v1073_v44 = vsub.f32 %v1057_v15, %v1065_v18  ;;  %v1098_v29 = vsub.f32 %v1057_v15, %v2533_v0  ;;  %v1103_v6 = vmul.f32 0.9, %v1070_v36  ;;  %v1107_v20 = vmul.f32 0.1, %v1091_v21 }
 0x346   : > { %v1108_v38 = vmul.f32 0.1, %v1092_v25  ;;  %v1104_v58 = vmul.f32 0.9, %v1071_v23  ;;  %v1109_v12 = vmul.f32 0.1, %v1093_v26  ;;  %v1223_v4 = vadd.f32 %v1222_v8, %v1221_v42 }
 0x347   : > { %v1110_v54 = vmul.f32 0.1, %v1094_v59  ;;  %v1105_v37 = vmul.f32 0.9, %v1072_v30  ;;  %v1111_v50 = vmul.f32 0.1, %v1095_v7  ;;  %v1115_v39 = vadd.f32 %v1107_v20, %v1099_v10 }
 0x348   : > { %v1112_v57 = vmul.f32 0.1, %v1096_v41  ;;  %v1113_v61 = vmul.f32 0.1, %v1097_v33  ;;  %v1116_v45 = vadd.f32 %v1108_v38, %v1100_v31  ;;  %v1117_v63 = vadd.f32 %v1109_v12, %v1101_v24 }
 0x349   : > { %v1118_v49 = vadd.f32 %v1110_v54, %v1102_v17  ;;  %v1106_v47 = vmul.f32 0.9, %v1073_v44  ;;  %v1114_v40 = vmul.f32 0.1, %v1098_v29  ;;  %v1119_v27 = vadd.f32 %v1111_v50, %v1103_v6 }
 0x34a   : > { %v1147_v0 = vmul.f32 %v2420_v48, %v1115_v39  ;;  %v1120_v1 = vadd.f32 %v1112_v57, %v1104_v58  ;;  %v1148_v5 = vmul.f32 %v2425_v32, %v1116_v45  ;;  %v1149_v43 = vmul.f32 %v2430_v60, %v1117_v63 }
 0x34b   : > { %v1150_v42 = vmul.f32 %v2435_v46, %v1118_v49  ;;  %vm1193_vm10 = vcmp.eq.s32.totalorder %v1185_v56, %v2712_v34  ;;  %v1225_v21 = vadd.f32 %v1224_v35, %v1223_v4  ;;  %v1226_v48 = vsel %vm829_vm2, %v2540_v13, 0.0  ;;  %v2720_v56 = vld [vmem:[#allocation24_spill] sm:$0xff] }
 0x34c   : > { %v1155_v8 = vsel %vm829_vm2, %v1147_v0, 0.0  ;;  %v1121_v52 = vadd.f32 %v1113_v61, %v1105_v37  ;;  %v1151_v32 = vmul.f32 %v2447_v28, %v1119_v27  ;;  %v1156_v60 = vsel %vm829_vm2, %v1148_v5, 0.0  ;;  %vm1201_vm0 = vmand %vm1193_vm10, %vm1129_vm1 }
 0x34d   : > { %v1158_v46 = vsel %vm829_vm2, %v1149_v43, 0.0  ;;  %v1157_v14 = vadd.f32 %v1156_v60, %v1155_v8  ;;  %v1122_v55 = vadd.f32 %v1114_v40, %v1106_v47  ;;  %v1152_v16 = vmul.f32 %v2455_v22, %v1120_v1 }
 0x34e   : > { %v1160_v51 = vsel %vm829_vm2, %v1150_v42, 0.0  ;;  %vm1194_vm11 = vcmp.eq.s32.totalorder %v1186_v11, %v2713_v62  ;;  %v1227_v28 = vadd.f32 %v1226_v48, %v1225_v21  ;;  %v1153_v35 = vmul.f32 %v2463_v19, %v1121_v52 }
 0x34f   : > { %v1159_v13 = vadd.f32 %v1158_v46, %v1157_v14  ;;  %v1162_v53 = vsel %vm829_vm2, %v1151_v32, 0.0  ;;  %v1228_v18 = vsel %vm829_vm2, %v1450_v2, 0.0  ;;  %v1451_v25 = vsel %vm1201_vm0, 1.0, %v1761_v9  ;;  %vm1202_vm1 = vmand %vm1194_vm11, %vm1130_vm9 }
 0x350   : > { %v1154_v22 = vmul.f32 %v2470_v3, %v1122_v55  ;;  %v1164_v26 = vsel %vm829_vm2, %v1152_v16, 0.0  ;;  %v1229_v15 = vadd.f32 %v1228_v18, %v1227_v28  ;;  %v1166_v23 = vsel %vm829_vm2, %v1153_v35, 0.0 }
 0x351   : > { %v1161_v36 = vadd.f32 %v1160_v51, %v1159_v13  ;;  %v1230_v19 = vsel %vm829_vm2, %v1451_v25, 0.0  ;;  %v1452_v7 = vsel %vm1202_vm1, 1.0, %v1761_v9  ;;  %vm1268_vm9 = vcmp.eq.s32.totalorder %v2720_v56, 1 }
 0x352   : > { %v1168_v30 = vsel %vm829_vm2, %v1154_v22, 0.0  ;;  %v1231_v10 = vadd.f32 %v1230_v19, %v1229_v15  ;;  %v1232_v3 = vsel %vm829_vm2, %v1452_v7, 0.0  ;;  %vm1269_vm2 = vcmp.eq.s32.totalorder %v2720_v56, 2 }
 0x353   : > { %v1163_v34 = vadd.f32 %v1162_v53, %v1161_v36  ;;  %vm1267_vm12 = vcmp.eq.s32.totalorder %v2720_v56, 0 }
 0x354   : > { %v1233_v44 = vadd.f32 %v1232_v3, %v1231_v10 }
 0x355   : > { %v1165_v59 = vadd.f32 %v1164_v26, %v1163_v34 }
 0x357   : > { %v1167_v41 = vadd.f32 %v1166_v23, %v1165_v59 }
 0x359   : > { %v1169_v31 = vadd.f32 %v1168_v30, %v1167_v41 }
 0x35b   : > { %1170 = vadd.xlane.f32.xlu0 %v1169_v31 }
 0x35f   : > { %1234 = vadd.xlane.f32.xlu0 %v1233_v44 }
 0x3c3   : > { %v1259_v62 = vpop.xlane.xlu1 %1258 }
 0x3c4   : > { %v1260_v33 = vrot.slane %v1259_v62, 4 }
 0x3c6   : > { %v1261_v24 = vadd.f32 %v1260_v33, %v1259_v62 }
 0x3c8   : > { %v1262_v20 = vrot.slane %v1261_v24, 2 }
 0x3ca   : > { %v1263_v4 = vadd.f32 %v1262_v20, %v1261_v24 }
 0x3cc   : > { %v1264_v61 = vrot.slane %v1263_v4, 1 }
 0x3ce   : > { %v1265_v49 = vadd.f32 %v1264_v61, %v1263_v4 }
 0x3e4   : > { %v1171_v17 = vpop.xlane.xlu0 %1170 }
 0x3e5   : > { %v1172_v29 = vrot.slane %v1171_v17, 4 }
 0x3e7   : > { %v1173_v6 = vadd.f32 %v1172_v29, %v1171_v17 }
 0x3e8   : > { %v1235_v38 = vpop.xlane.xlu0 %1234 }
 0x3e9   : > { %v1174_v58 = vrot.slane %v1173_v6, 2  ;;  %v1236_v9 = vrot.slane %v1235_v38, 4 }
 0x3eb   : > { %v1237_v12 = vadd.f32 %v1236_v9, %v1235_v38  ;;  %v1175_v54 = vadd.f32 %v1174_v58, %v1173_v6 }
 0x3ed   : > { %v1238_v37 = vrot.slane %v1237_v12, 2  ;;  %v1176_v50 = vrot.slane %v1175_v54, 1 }
 0x3ef   : > { %v1239_v57 = vadd.f32 %v1238_v37, %v1237_v12  ;;  %v1177_v39 = vadd.f32 %v1176_v50, %v1175_v54 }
 0x3f1   : > { %1489 = vpush %v1177_v39  ;;  %v1240_v45 = vrot.slane %v1239_v57, 1 }
 0x3f3   : > { %v1241_v63 = vadd.f32 %v1240_v45, %v1239_v57 }
 0x3f5   : > { %1491 = vpush %v1241_v63 }
 0x3f6   : > { %1493 = vpush %v1265_v49 }
 0x422   : > { %s1490_s20 = spop %1489 }
 0x423   : > { %v1274_v0 = vstv %s1490_s20 }
 0x426   : > { %s1492_s23 = spop %1491 }
 0x427   : > { %v1272_v47 = vstv %s1492_s23  ;;  %s1494_s28 = spop %1493 }
 0x428   : > { %v1270_v40 = vstv %s1494_s28 }
 0x429   : > { %v1271_v27 = vsel %vm1269_vm2, %v1270_v40, 0.0 }
 0x42a   : > { %v1273_v1 = vsel %vm1268_vm9, %v1272_v47, %v1271_v27 }
 0x42b   : > { %v1275_v5 = vsel %vm1267_vm12, %v1274_v0, %v1273_v1 }
 0x42c   : > { %1276 = vst [vmem:[%s321_s7] sm:$0xff] %v1275_v5 }
 0x42d PF: > { %s1454_s6 = sshll.u32 %s1742_s21, 7  ;;  %s1291_s25 = sshll.u32 %s321_s7, 4  ;;  %s1292_s25 = int_to_ptr.vmem [resolvable:$true] %s1291_s25 }
 0x42e   : > { %s1289_s14 = scalar_lea.hbm %s2652_s4, %s1454_s6  ;;  %s2721_s29 = sand.u32 1, %s1722_s16  }
 0x42f   : > { %s1278_s26 = scalar_lea.sflag [#allocation9], %s2721_s29  ;;  %s1646_s30 = scalar_lea.vmem %s1292_s25, 128 }
 0x430   : > { %p1647_p7 = scmp.ne.s32.totalorder %s1292_s25, %s1646_s30  ;;  %s1762_s18 = smov [#allocation8]  }
 0x431   : > { %s1650_s5 = sshll.u32 %s1762_s18, 4  ;;  %s1651_s5 = int_to_ptr.vmem [resolvable:$false] %s1650_s5 }
 0x432   : > { %p1648_p8 = pnand %p1647_p7, %p1867_p10  ;;  %s1652_s1 = scalar_lea.vmem %s1651_s5, 256 }
 0x433   : > { %p1653_p11 = scmp.lt.s32.totalorder %s1292_s25, %s1651_s5  ;;  %p1654_p13 = scmp.lt.s32.totalorder %s1652_s1, %s1646_s30 }
 0x434   : > { %p1649_p9 = pneg %p1648_p8 }
 0x435   : > { %p1655_p0 = por %p1654_p13, %p1653_p11 }
 0x437   : > { %p1656_p1 = pnand %p1655_p0, %p1649_p9 }
 0x439   : > { %1659 = shalt.err (!%p1656_p1)
}
 0x43a   : > { %s1660_s21 = scalar_lea.hbm %s1289_s14, 128  ;;  %s1664_s22 = scalar_lea.hbm %s2652_s4, 256 }
 0x43b   : > { %p1661_p2 = scmp.ne.s32.totalorder %s1289_s14, %s1660_s21  ;;  %p1665_p5 = scmp.lt.s32.totalorder %s1289_s14, %s2652_s4 }
 0x43c   : > { %p1666_p6 = scmp.lt.s32.totalorder %s1664_s22, %s1660_s21 }
 0x43d   : > { %p1662_p3 = pnand %p1661_p2, %p1867_p10 }
 0x43e   : > { %p1667_p7 = por %p1666_p6, %p1665_p5 }
 0x43f   : > { %p1663_p4 = pneg %p1662_p3 }
 0x441   : > { %p1668_p8 = pnand %p1667_p7, %p1663_p4 }
 0x443   : > { %1671 = shalt.err (!%p1668_p8)
}
 0x444   : > { %1495 = dma.vmem_to_hbm [thread:$0]  (%p1867_p10), %s1292_s25, 128, %s1289_s14, %s1278_s26  }
 0x445 PF: > { %p1501_p9 = scmp.ge.s32.totalorder %s1754_s24, 2  ;;  %s1303_s23 = sand.u32 1, %s1718_s15  }
 0x446   : > { %s1304_s28 = scalar_lea.sflag [#allocation9], %s1303_s23 }
 0x447   : > { %p1498_p11 = pnand %p1501_p9, %p1874_p12 }
 0x449   : > { %p1499_p13 = pneg %p1498_p11 }
 0x44b   : > { %1713 = dma.done.wait (%p1499_p13), %s1304_s28, 128  }
 0x44c   : > { %1715 = vsyncadd (%p1499_p13), %s1304_s28, 4294967168  ;;  %s17_s24 = sadd.s32 1, %s1754_s24   ;;  %s2722_s9 = sld [smem:[#allocation15_spill]] }
 0x44d   : > { %p14_p0 = scmp.ge.s32.totalorder %s17_s24, 6   ;;  %s2723_s20 = sld [smem:[#allocation11_spill]] }
 0x44e   : > { %s2724_s21 = sld [smem:[#allocation12_spill]]  ;;  %s2727_s15 = smov %s1722_s16 }
 0x44f   : > { %s2725_s22 = sld [smem:[#allocation13_spill]]  ;;  %s2728_s16 = smov %s1726_s17 }
 0x450   : > { %s2726_s23 = sld [smem:[#allocation14_spill]]  ;;  %s2729_s17 = smov %s1872_s10 }
 0x451   : > { %s2730_s18 = smov %s1734_s19  ;;  %16 = sbr.rel (!%p14_p0) target bundleno = 8 (0x8), region = 134 }
 0x452   : > { %s2731_s19 = smov %s2722_s9 }
 0x456   :  { %1309 = vsyncpa [#allocation9], 1 }
 0x457   :  { %1311 = vsyncpa [#allocation9 + $0x1], 1 }

</bundles_post_ra>
